<compile_context>
chip_gen: v7x
topology: tpu7x:2x2x1
jax: 0.10.0
libtpu: 0.0.40
codegen_flags: <defaults>
</compile_context>

<pallas_src>
import jax
import jax.numpy as jnp
import numpy as np
from jax import lax
from jax.experimental import pallas as pl
from jax.experimental.pallas import tpu as pltpu


# ----------------------------- Pallas kernel --------------------------------
def _bilstm_crf_kernel(x_ref,                       # (T, BT, E)  cdt embeddings, time-major
                       wih_ref, b_ih_ref,           # (E, 8H) cdt, (1, 8H) f32  (fwd||bwd)
                       whh_ref,                     # (H, 8H) cdt               (fwd||bwd)
                       wcf_ref, wcb_ref, bcrf_ref,  # (H, C*C) cdt x2, (1, C*C) f32
                       out_ref,                     # (T, BT, C*C) f32, time-major
                       xw_s, hf_s, hb_s):           # scratch: (T*BT,8H), (T*BT,H), (T*BT,H)
    T, BT, E = x_ref.shape
    H = whh_ref.shape[0]
    CC = wcf_ref.shape[1]
    cdt = wih_ref.dtype
    H4 = 4 * H

    # ---- fused input projection (both directions, one MXU pass) -------------
    x2 = x_ref[...].reshape(T * BT, E)                           # already compute dtype
    xw_s[...] = (jnp.dot(x2, wih_ref[...], preferred_element_type=jnp.float32)
                 + b_ih_ref[...])                                # (T*BT, 8H) f32

    whh = whh_ref[...]                                           # (H, 8H) cdt

    def step(t, carry):
        # rows [0:BT] = forward direction at time t,
        # rows [BT:2BT] = backward direction at time T-1-t.
        h2, c2 = carry                                           # (2BT, H) f32 each
        tb = T - 1 - t
        rf = pl.multiple_of(t * BT, BT)
        rb = pl.multiple_of(tb * BT, BT)

        # one fused (2BT, H) @ (H, 8H) recurrence matmul; keep the diagonal quadrants
        rec = jnp.dot(h2.astype(cdt), whh, preferred_element_type=jnp.float32)
        gates_f = xw_s[pl.ds(rf, BT), pl.ds(0, H4)] + rec[0:BT, 0:H4]
        gates_b = xw_s[pl.ds(rb, BT), pl.ds(H4, H4)] + rec[BT:2 * BT, H4:2 * H4]
        gates = jnp.concatenate([gates_f, gates_b], axis=0)      # (2BT, 4H) f32

        # one full-width sigmoid (i, f, o lanes) + tanh on the g slice; gate math
        # and cell state stay f32 (v5e-safe elementwise path).
        sg = jax.nn.sigmoid(gates)
        i = sg[:, 0 * H:1 * H]
        f = sg[:, 1 * H:2 * H]
        o = sg[:, 3 * H:4 * H]
        g = jnp.tanh(gates[:, 2 * H:3 * H])
        c_new = f * c2 + i * g
        h_new = o * jnp.tanh(c_new)

        hf_s[pl.ds(rf, BT), :] = h_new[0:BT]
        hb_s[pl.ds(rb, BT), :] = h_new[BT:2 * BT]
        return (h_new, c_new)

    zeros = jnp.zeros((2 * BT, H), jnp.float32)
    # Unrolled interleaved recurrence (short fixed T) -> LLO overlaps both directions.
    lax.fori_loop(0, T, step, (zeros, zeros), unroll=True)

    # ---- classifier with CRF folded in (column-tiled weights) ---------------
    # crf[t, b, i*C + j] = emission[t, b, j] + transition[i, j]
    crf = (jnp.dot(hf_s[...].astype(cdt), wcf_ref[...],
                   preferred_element_type=jnp.float32)
           + jnp.dot(hb_s[...].astype(cdt), wcb_ref[...],
                     preferred_element_type=jnp.float32)
           + bcrf_ref[...])                                      # (T*BT, C*C) f32
    out_ref[...] = crf.reshape(T, BT, CC)                        # time-major, no transpose


# ------------------------------- wrapper -------------------------------------
def mymodel_forward(batch_ids, params, *, compute_dtype=jnp.bfloat16, batch_tile=8):
    """Equivalent of Mymodel.forward(batch_data) (no batch_tag): returns crf_scores."""
    B0, T = batch_ids.shape
    BT = batch_tile
    assert BT % 8 == 0, "batch_tile must be a multiple of 8 (sublane alignment)"
    pad = (-B0) % BT
    if pad:
        batch_ids = jnp.concatenate(
            [batch_ids, jnp.zeros((pad, T), batch_ids.dtype)], axis=0)
    B = B0 + pad

    E = params["embedding"].shape[1]
    H = params["whh_f"].shape[0]
    C = params["trans"].shape[0]
    cdt = compute_dtype

    # Embedding gather + time-major layout + compute-dtype cast (XLA glue).
    emb = params["embedding"][batch_ids]                          # (B, T, E)
    x_tm = jnp.transpose(emb, (1, 0, 2)).astype(cdt)              # (T, B, E)

    # Fused fwd||bwd LSTM weights (column concat) and fused bias.
    wih = jnp.concatenate([params["wih_f"], params["wih_b"]], axis=1).astype(cdt)   # (E, 8H)
    whh = jnp.concatenate([params["whh_f"], params["whh_b"]], axis=1).astype(cdt)   # (H, 8H)
    b_ih = jnp.concatenate([params["b_f"], params["b_b"]], axis=1).astype(jnp.float32)

    # CRF folded into classifier: tile columns C times; bias = tiled b_c + transition.
    wcf = jnp.tile(params["wcf"], (1, C)).astype(cdt)             # (H, C*C)
    wcb = jnp.tile(params["wcb"], (1, C)).astype(cdt)             # (H, C*C)
    bcrf = (jnp.tile(params["b_c"], (1, C))
            + params["trans"].reshape(1, C * C)).astype(jnp.float32)

    full = lambda *shape: pl.BlockSpec(shape, lambda b: (0,) * len(shape))

    grid_spec = pltpu.PrefetchScalarGridSpec(
        num_scalar_prefetch=0,
        grid=(B // BT,),
        in_specs=[
            pl.BlockSpec((T, BT, E), lambda b: (0, b, 0)),        # batch tile of embeddings
            full(E, 8 * H), full(1, 8 * H), full(H, 8 * H),       # fused LSTM params
            full(H, C * C), full(H, C * C), full(1, C * C),       # CRF-folded classifier
        ],
        out_specs=pl.BlockSpec((T, BT, C * C), lambda b: (0, b, 0)),
        scratch_shapes=[pltpu.VMEM((T * BT, 8 * H), jnp.float32),
                        pltpu.VMEM((T * BT, H), jnp.float32),
                        pltpu.VMEM((T * BT, H), jnp.float32)],
    )

    crf_tm = pl.pallas_call(
        _bilstm_crf_kernel,
        out_shape=jax.ShapeDtypeStruct((T, B, C * C), jnp.float32),
        grid_spec=grid_spec,
        compiler_params=pltpu.CompilerParams(
            dimension_semantics=("parallel",)),
    )(x_tm, wih, b_ih, whh, wcf, wcb, bcrf)

    # time-major (T, B, C*C) -> (B, T, C, C): layout glue on a ~32 KB result.
    return jnp.transpose(crf_tm, (1, 0, 2)).reshape(B, T, C, C)[:B0]


# --------------------------- parameter init ----------------------------------
def init_params(key, corpus_num, embedding_num, hidden_num, class_num):
    E, H, C = embedding_num, hidden_num, class_num
    ks = jax.random.split(key, 10)
    s_lstm = 1.0 / (H ** 0.5)
    s_cls = 1.0 / ((2 * H) ** 0.5)
    u = lambda k, shape, s: jax.random.uniform(k, shape, jnp.float32, -s, s)
    params = {
        # nn.Embedding(corpus_num, embedding_num): weights ~ N(0, 1)
        "embedding": jax.random.normal(ks[0], (corpus_num, E), jnp.float32),
        # nn.LSTM(E, H, bidirectional=True): weights stored pre-transposed (in, 4H)
        "wih_f": u(ks[1], (E, 4 * H), s_lstm),
        "whh_f": u(ks[2], (H, 4 * H), s_lstm),
        "b_f":   u(ks[3], (1, 4 * H), s_lstm),   # b_ih + b_hh fused
        "wih_b": u(ks[4], (E, 4 * H), s_lstm),
        "whh_b": u(ks[5], (H, 4 * H), s_lstm),
        "b_b":   u(ks[6], (1, 4 * H), s_lstm),
        # nn.Linear(2H, C) split into forward/backward halves of W^T
        "b_c":   u(ks[8], (1, C), s_cls),
        # transition = ones(C, C) / C
        "trans": jnp.ones((C, C), jnp.float32) / C,
    }
    w_cls_t = u(ks[7], (2 * H, C), s_cls)        # (2H, C) = W^T
    params["wcf"] = w_cls_t[:H]
    params["wcb"] = w_cls_t[H:]
    return params


# ------------------------- pure-JAX reference --------------------------------
def _lstm_ref(x, wih, whh, b, cdt):
    B, T, _ = x.shape
    H = whh.shape[0]
    wih = wih.astype(cdt)
    whh = whh.astype(cdt)

    def step(carry, x_t):
        h, c = carry
        gates = (jnp.dot(x_t.astype(cdt), wih, preferred_element_type=jnp.float32)
                 + jnp.dot(h.astype(cdt), whh, preferred_element_type=jnp.float32)
                 + b)
        i, f, g, o = jnp.split(gates, 4, axis=-1)
        c = jax.nn.sigmoid(f) * c + jax.nn.sigmoid(i) * jnp.tanh(g)
        h = jax.nn.sigmoid(o) * jnp.tanh(c)
        return (h, c), h

    init = (jnp.zeros((B, H), jnp.float32), jnp.zeros((B, H), jnp.float32))
    _, hs = lax.scan(step, init, jnp.transpose(x, (1, 0, 2)))
    return jnp.transpose(hs, (1, 0, 2))


def mymodel_forward_ref(batch_ids, params, *, compute_dtype=jnp.bfloat16):
    cdt = compute_dtype
    x = params["embedding"][batch_ids].astype(jnp.float32)
    hf = _lstm_ref(x, params["wih_f"], params["whh_f"], params["b_f"], cdt)
    hb = _lstm_ref(x[:, ::-1], params["wih_b"], params["whh_b"],
                   params["b_b"], cdt)[:, ::-1]
    emission = (jnp.dot(hf.astype(cdt), params["wcf"].astype(cdt),
                        preferred_element_type=jnp.float32)
                + jnp.dot(hb.astype(cdt), params["wcb"].astype(cdt),
                          preferred_element_type=jnp.float32)
                + params["b_c"])
    return emission[:, :, None, :] + params["trans"][None, None]


# ---------------------------------- main --------------------------------------
if __name__ == "__main__":
    corpus_num, embedding_num, hidden_num, class_num = 50, 16, 32, 8
    B, T = 16, 8

    key = jax.random.PRNGKey(0)
    k_params, k_data = jax.random.split(key)
    params = init_params(k_params, corpus_num, embedding_num, hidden_num, class_num)
    batch_ids = jax.random.randint(k_data, (B, T), 0, corpus_num, dtype=jnp.int32)

    crf_scores = jax.block_until_ready(mymodel_forward(batch_ids, params))
    assert crf_scores.shape == (B, T, class_num, class_num)

    ref = jax.block_until_ready(mymodel_forward_ref(batch_ids, params))
    np.testing.assert_allclose(np.asarray(crf_scores), np.asarray(ref),
                               rtol=1e-2, atol=1e-2)
    # TODO(synk): cal_lstm_crf_loss / viterbi decode (test) paths use host-side,
    # data-dependent loops over variable batch_size_t and are not ported; only
    # forward() is implemented.
    print("KERNEL_OK")
</pallas_src>

<mosaic_0001>
module attributes {stable_mosaic.version = 11 : i64} {
  func.func @_bilstm_crf_kernel(%arg0: i32, %arg1: memref<8x8x16xbf16, #tpu.memory_space<vmem>>, %arg2: memref<16x256xbf16, #tpu.memory_space<vmem>>, %arg3: memref<1x256xf32, #tpu.memory_space<vmem>>, %arg4: memref<32x256xbf16, #tpu.memory_space<vmem>>, %arg5: memref<32x64xbf16, #tpu.memory_space<vmem>>, %arg6: memref<32x64xbf16, #tpu.memory_space<vmem>>, %arg7: memref<1x64xf32, #tpu.memory_space<vmem>>, %arg8: memref<8x8x64xf32, #tpu.memory_space<vmem>>, %arg9: memref<64x256xf32, #tpu.memory_space<vmem>>, %arg10: memref<64x32xf32, #tpu.memory_space<vmem>>, %arg11: memref<64x32xf32, #tpu.memory_space<vmem>>) attributes {dimension_semantics = [#tpu.dimension_semantics<parallel>], iteration_bounds = array<i64: 2>, scalar_prefetch = 0 : i64, scratch_operands = 3 : i64, tpu.core_type = #tpu.core_type<tc>, window_params = [{transform_indices = @transform_0, window_bounds = array<i64: 8, 8, 16>}, {pipeline_mode = #tpu.pipeline_mode<synchronous>, transform_indices = @transform_1, window_bounds = array<i64: 16, 256>}, {pipeline_mode = #tpu.pipeline_mode<synchronous>, transform_indices = @transform_2, window_bounds = array<i64: 1, 256>}, {pipeline_mode = #tpu.pipeline_mode<synchronous>, transform_indices = @transform_3, window_bounds = array<i64: 32, 256>}, {pipeline_mode = #tpu.pipeline_mode<synchronous>, transform_indices = @transform_4, window_bounds = array<i64: 32, 64>}, {pipeline_mode = #tpu.pipeline_mode<synchronous>, transform_indices = @transform_5, window_bounds = array<i64: 32, 64>}, {pipeline_mode = #tpu.pipeline_mode<synchronous>, transform_indices = @transform_6, window_bounds = array<i64: 1, 64>}, {transform_indices = @transform_7, window_bounds = array<i64: 8, 8, 64>}]} {
    %c0 = arith.constant 0 : index
    %c0_0 = arith.constant 0 : index
    %c0_1 = arith.constant 0 : index
    %0 = vector.load %arg1[%c0, %c0_0, %c0_1] : memref<8x8x16xbf16, #tpu.memory_space<vmem>>, vector<8x8x16xbf16>
    %1 = vector.shape_cast %0 : vector<8x8x16xbf16> to vector<64x16xbf16>
    %c0_2 = arith.constant 0 : index
    %c0_3 = arith.constant 0 : index
    %2 = vector.load %arg2[%c0_2, %c0_3] : memref<16x256xbf16, #tpu.memory_space<vmem>>, vector<16x256xbf16>
    %cst = arith.constant dense<0.000000e+00> : vector<64x256xf32>
    %3 = tpu.matmul %1, %2, %cst {dimension_numbers = #tpu.dot_dimension_numbers<[1], [0], [0], [1], [0, 0, 1, 1], [], []>} : vector<64x16xbf16>, vector<16x256xbf16>, vector<64x256xf32> -> vector<64x256xf32>
    %c0_4 = arith.constant 0 : index
    %c0_5 = arith.constant 0 : index
    %4 = vector.load %arg3[%c0_4, %c0_5] : memref<1x256xf32, #tpu.memory_space<vmem>>, vector<1x256xf32>
    %5 = vector.broadcast %4 : vector<1x256xf32> to vector<64x256xf32>
    %6 = arith.addf %3, %5 : vector<64x256xf32>
    %c0_6 = arith.constant 0 : index
    %c0_7 = arith.constant 0 : index
    %7 = vector.load %arg9[%c0_6, %c0_7] : memref<64x256xf32, #tpu.memory_space<vmem>>, vector<64x256xf32>
    tpu.vector_store %arg9[%c0_6, %c0_7], %6 {strides = array<i32>} : memref<64x256xf32, #tpu.memory_space<vmem>>, vector<64x256xf32>,
    %c0_8 = arith.constant 0 : index
    %c0_9 = arith.constant 0 : index
    %8 = vector.load %arg4[%c0_8, %c0_9] : memref<32x256xbf16, #tpu.memory_space<vmem>>, vector<32x256xbf16>
    %cst_10 = arith.constant 0.000000e+00 : f32
    %9 = vector.broadcast %cst_10 : f32 to vector<16x32xf32>
    %c0_i32 = arith.constant 0 : i32
    %c7_i32 = arith.constant 7 : i32
    %10 = arith.subi %c7_i32, %c0_i32 : i32
    %c8_i32 = arith.constant 8 : i32
    %11 = arith.muli %c0_i32, %c8_i32 : i32
    %12 = tpu.assume_multiple %11, 8 : i32
    %c8_i32_11 = arith.constant 8 : i32
    %13 = arith.muli %10, %c8_i32_11 : i32
    %14 = tpu.assume_multiple %13, 8 : i32
    %15 = arith.truncf %9 : vector<16x32xf32> to vector<16x32xbf16>
    %cst_12 = arith.constant dense<0.000000e+00> : vector<16x256xf32>
    %16 = tpu.matmul %15, %8, %cst_12 {dimension_numbers = #tpu.dot_dimension_numbers<[1], [0], [0], [1], [0, 0, 1, 1], [], []>} : vector<16x32xbf16>, vector<32x256xbf16>, vector<16x256xf32> -> vector<16x256xf32>
    %17 = arith.index_cast %12 : i32 to index
    %c0_13 = arith.constant 0 : index
    %18 = vector.load %arg9[%17, %c0_13] : memref<64x256xf32, #tpu.memory_space<vmem>>, vector<8x128xf32>
    %19 = vector.extract_strided_slice %16 {offsets = [0, 0], sizes = [8, 128], strides = [1, 1]} : vector<16x256xf32> to vector<8x128xf32>
    %20 = arith.addf %18, %19 : vector<8x128xf32>
    %21 = arith.index_cast %14 : i32 to index
    %c128 = arith.constant 128 : index
    %22 = vector.load %arg9[%21, %c128] : memref<64x256xf32, #tpu.memory_space<vmem>>, vector<8x128xf32>
    %23 = vector.extract_strided_slice %16 {offsets = [8, 128], sizes = [8, 128], strides = [1, 1]} : vector<16x256xf32> to vector<8x128xf32>
    %24 = arith.addf %22, %23 : vector<8x128xf32>
    %25 = tpu.concatenate %20, %24 in 0 : vector<8x128xf32>, vector<8x128xf32> -> vector<16x128xf32>
    %26 = arith.negf %25 : vector<16x128xf32>
    %27 = math.exp %26 : vector<16x128xf32>
    %cst_14 = arith.constant 1.000000e+00 : f32
    %28 = vector.broadcast %cst_14 : f32 to vector<16x128xf32>
    %29 = arith.addf %28, %27 : vector<16x128xf32>
    %30 = arith.divf %28, %29 : vector<16x128xf32>
    %31 = vector.extract_strided_slice %30 {offsets = [0, 0], sizes = [16, 32], strides = [1, 1]} : vector<16x128xf32> to vector<16x32xf32>
    %32 = vector.extract_strided_slice %30 {offsets = [0, 32], sizes = [16, 32], strides = [1, 1]} : vector<16x128xf32> to vector<16x32xf32>
    %33 = vector.extract_strided_slice %30 {offsets = [0, 96], sizes = [16, 32], strides = [1, 1]} : vector<16x128xf32> to vector<16x32xf32>
    %34 = vector.extract_strided_slice %25 {offsets = [0, 64], sizes = [16, 32], strides = [1, 1]} : vector<16x128xf32> to vector<16x32xf32>
    %35 = math.tanh %34 : vector<16x32xf32>
    %36 = arith.mulf %32, %9 : vector<16x32xf32>
    %37 = arith.mulf %31, %35 : vector<16x32xf32>
    %38 = arith.addf %36, %37 : vector<16x32xf32>
    %39 = math.tanh %38 : vector<16x32xf32>
    %40 = arith.mulf %33, %39 : vector<16x32xf32>
    %41 = vector.extract_strided_slice %40 {offsets = [0, 0], sizes = [8, 32], strides = [1, 1]} : vector<16x32xf32> to vector<8x32xf32>
    %42 = arith.index_cast %12 : i32 to index
    %c0_15 = arith.constant 0 : index
    %43 = vector.load %arg10[%42, %c0_15] : memref<64x32xf32, #tpu.memory_space<vmem>>, vector<8x32xf32>
    tpu.vector_store %arg10[%42, %c0_15], %41 {strides = array<i32>} : memref<64x32xf32, #tpu.memory_space<vmem>>, vector<8x32xf32>,
    %44 = vector.extract_strided_slice %40 {offsets = [8, 0], sizes = [8, 32], strides = [1, 1]} : vector<16x32xf32> to vector<8x32xf32>
    %45 = arith.index_cast %14 : i32 to index
    %c0_16 = arith.constant 0 : index
    %46 = vector.load %arg11[%45, %c0_16] : memref<64x32xf32, #tpu.memory_space<vmem>>, vector<8x32xf32>
    tpu.vector_store %arg11[%45, %c0_16], %44 {strides = array<i32>} : memref<64x32xf32, #tpu.memory_space<vmem>>, vector<8x32xf32>,
    %c1_i32 = arith.constant 1 : i32
    %c7_i32_17 = arith.constant 7 : i32
    %47 = arith.subi %c7_i32_17, %c1_i32 : i32
    %c8_i32_18 = arith.constant 8 : i32
    %48 = arith.muli %c1_i32, %c8_i32_18 : i32
    %49 = tpu.assume_multiple %48, 8 : i32
    %c8_i32_19 = arith.constant 8 : i32
    %50 = arith.muli %47, %c8_i32_19 : i32
    %51 = tpu.assume_multiple %50, 8 : i32
    %52 = arith.truncf %40 : vector<16x32xf32> to vector<16x32xbf16>
    %cst_20 = arith.constant dense<0.000000e+00> : vector<16x256xf32>
    %53 = tpu.matmul %52, %8, %cst_20 {dimension_numbers = #tpu.dot_dimension_numbers<[1], [0], [0], [1], [0, 0, 1, 1], [], []>} : vector<16x32xbf16>, vector<32x256xbf16>, vector<16x256xf32> -> vector<16x256xf32>
    %54 = arith.index_cast %49 : i32 to index
    %c0_21 = arith.constant 0 : index
    %55 = vector.load %arg9[%54, %c0_21] : memref<64x256xf32, #tpu.memory_space<vmem>>, vector<8x128xf32>
    %56 = vector.extract_strided_slice %53 {offsets = [0, 0], sizes = [8, 128], strides = [1, 1]} : vector<16x256xf32> to vector<8x128xf32>
    %57 = arith.addf %55, %56 : vector<8x128xf32>
    %58 = arith.index_cast %51 : i32 to index
    %c128_22 = arith.constant 128 : index
    %59 = vector.load %arg9[%58, %c128_22] : memref<64x256xf32, #tpu.memory_space<vmem>>, vector<8x128xf32>
    %60 = vector.extract_strided_slice %53 {offsets = [8, 128], sizes = [8, 128], strides = [1, 1]} : vector<16x256xf32> to vector<8x128xf32>
    %61 = arith.addf %59, %60 : vector<8x128xf32>
    %62 = tpu.concatenate %57, %61 in 0 : vector<8x128xf32>, vector<8x128xf32> -> vector<16x128xf32>
    %63 = arith.negf %62 : vector<16x128xf32>
    %64 = math.exp %63 : vector<16x128xf32>
    %cst_23 = arith.constant 1.000000e+00 : f32
    %65 = vector.broadcast %cst_23 : f32 to vector<16x128xf32>
    %66 = arith.addf %65, %64 : vector<16x128xf32>
    %67 = arith.divf %65, %66 : vector<16x128xf32>
    %68 = vector.extract_strided_slice %67 {offsets = [0, 0], sizes = [16, 32], strides = [1, 1]} : vector<16x128xf32> to vector<16x32xf32>
    %69 = vector.extract_strided_slice %67 {offsets = [0, 32], sizes = [16, 32], strides = [1, 1]} : vector<16x128xf32> to vector<16x32xf32>
    %70 = vector.extract_strided_slice %67 {offsets = [0, 96], sizes = [16, 32], strides = [1, 1]} : vector<16x128xf32> to vector<16x32xf32>
    %71 = vector.extract_strided_slice %62 {offsets = [0, 64], sizes = [16, 32], strides = [1, 1]} : vector<16x128xf32> to vector<16x32xf32>
    %72 = math.tanh %71 : vector<16x32xf32>
    %73 = arith.mulf %69, %38 : vector<16x32xf32>
    %74 = arith.mulf %68, %72 : vector<16x32xf32>
    %75 = arith.addf %73, %74 : vector<16x32xf32>
    %76 = math.tanh %75 : vector<16x32xf32>
    %77 = arith.mulf %70, %76 : vector<16x32xf32>
    %78 = vector.extract_strided_slice %77 {offsets = [0, 0], sizes = [8, 32], strides = [1, 1]} : vector<16x32xf32> to vector<8x32xf32>
    %79 = arith.index_cast %49 : i32 to index
    %c0_24 = arith.constant 0 : index
    %80 = vector.load %arg10[%79, %c0_24] : memref<64x32xf32, #tpu.memory_space<vmem>>, vector<8x32xf32>
    tpu.vector_store %arg10[%79, %c0_24], %78 {strides = array<i32>} : memref<64x32xf32, #tpu.memory_space<vmem>>, vector<8x32xf32>,
    %81 = vector.extract_strided_slice %77 {offsets = [8, 0], sizes = [8, 32], strides = [1, 1]} : vector<16x32xf32> to vector<8x32xf32>
    %82 = arith.index_cast %51 : i32 to index
    %c0_25 = arith.constant 0 : index
    %83 = vector.load %arg11[%82, %c0_25] : memref<64x32xf32, #tpu.memory_space<vmem>>, vector<8x32xf32>
    tpu.vector_store %arg11[%82, %c0_25], %81 {strides = array<i32>} : memref<64x32xf32, #tpu.memory_space<vmem>>, vector<8x32xf32>,
    %c2_i32 = arith.constant 2 : i32
    %c7_i32_26 = arith.constant 7 : i32
    %84 = arith.subi %c7_i32_26, %c2_i32 : i32
    %c8_i32_27 = arith.constant 8 : i32
    %85 = arith.muli %c2_i32, %c8_i32_27 : i32
    %86 = tpu.assume_multiple %85, 8 : i32
    %c8_i32_28 = arith.constant 8 : i32
    %87 = arith.muli %84, %c8_i32_28 : i32
    %88 = tpu.assume_multiple %87, 8 : i32
    %89 = arith.truncf %77 : vector<16x32xf32> to vector<16x32xbf16>
    %cst_29 = arith.constant dense<0.000000e+00> : vector<16x256xf32>
    %90 = tpu.matmul %89, %8, %cst_29 {dimension_numbers = #tpu.dot_dimension_numbers<[1], [0], [0], [1], [0, 0, 1, 1], [], []>} : vector<16x32xbf16>, vector<32x256xbf16>, vector<16x256xf32> -> vector<16x256xf32>
    %91 = arith.index_cast %86 : i32 to index
    %c0_30 = arith.constant 0 : index
    %92 = vector.load %arg9[%91, %c0_30] : memref<64x256xf32, #tpu.memory_space<vmem>>, vector<8x128xf32>
    %93 = vector.extract_strided_slice %90 {offsets = [0, 0], sizes = [8, 128], strides = [1, 1]} : vector<16x256xf32> to vector<8x128xf32>
    %94 = arith.addf %92, %93 : vector<8x128xf32>
    %95 = arith.index_cast %88 : i32 to index
    %c128_31 = arith.constant 128 : index
    %96 = vector.load %arg9[%95, %c128_31] : memref<64x256xf32, #tpu.memory_space<vmem>>, vector<8x128xf32>
    %97 = vector.extract_strided_slice %90 {offsets = [8, 128], sizes = [8, 128], strides = [1, 1]} : vector<16x256xf32> to vector<8x128xf32>
    %98 = arith.addf %96, %97 : vector<8x128xf32>
    %99 = tpu.concatenate %94, %98 in 0 : vector<8x128xf32>, vector<8x128xf32> -> vector<16x128xf32>
    %100 = arith.negf %99 : vector<16x128xf32>
    %101 = math.exp %100 : vector<16x128xf32>
    %cst_32 = arith.constant 1.000000e+00 : f32
    %102 = vector.broadcast %cst_32 : f32 to vector<16x128xf32>
    %103 = arith.addf %102, %101 : vector<16x128xf32>
    %104 = arith.divf %102, %103 : vector<16x128xf32>
    %105 = vector.extract_strided_slice %104 {offsets = [0, 0], sizes = [16, 32], strides = [1, 1]} : vector<16x128xf32> to vector<16x32xf32>
    %106 = vector.extract_strided_slice %104 {offsets = [0, 32], sizes = [16, 32], strides = [1, 1]} : vector<16x128xf32> to vector<16x32xf32>
    %107 = vector.extract_strided_slice %104 {offsets = [0, 96], sizes = [16, 32], strides = [1, 1]} : vector<16x128xf32> to vector<16x32xf32>
    %108 = vector.extract_strided_slice %99 {offsets = [0, 64], sizes = [16, 32], strides = [1, 1]} : vector<16x128xf32> to vector<16x32xf32>
    %109 = math.tanh %108 : vector<16x32xf32>
    %110 = arith.mulf %106, %75 : vector<16x32xf32>
    %111 = arith.mulf %105, %109 : vector<16x32xf32>
    %112 = arith.addf %110, %111 : vector<16x32xf32>
    %113 = math.tanh %112 : vector<16x32xf32>
    %114 = arith.mulf %107, %113 : vector<16x32xf32>
    %115 = vector.extract_strided_slice %114 {offsets = [0, 0], sizes = [8, 32], strides = [1, 1]} : vector<16x32xf32> to vector<8x32xf32>
    %116 = arith.index_cast %86 : i32 to index
    %c0_33 = arith.constant 0 : index
    %117 = vector.load %arg10[%116, %c0_33] : memref<64x32xf32, #tpu.memory_space<vmem>>, vector<8x32xf32>
    tpu.vector_store %arg10[%116, %c0_33], %115 {strides = array<i32>} : memref<64x32xf32, #tpu.memory_space<vmem>>, vector<8x32xf32>,
    %118 = vector.extract_strided_slice %114 {offsets = [8, 0], sizes = [8, 32], strides = [1, 1]} : vector<16x32xf32> to vector<8x32xf32>
    %119 = arith.index_cast %88 : i32 to index
    %c0_34 = arith.constant 0 : index
    %120 = vector.load %arg11[%119, %c0_34] : memref<64x32xf32, #tpu.memory_space<vmem>>, vector<8x32xf32>
    tpu.vector_store %arg11[%119, %c0_34], %118 {strides = array<i32>} : memref<64x32xf32, #tpu.memory_space<vmem>>, vector<8x32xf32>,
    %c3_i32 = arith.constant 3 : i32
    %c7_i32_35 = arith.constant 7 : i32
    %121 = arith.subi %c7_i32_35, %c3_i32 : i32
    %c8_i32_36 = arith.constant 8 : i32
    %122 = arith.muli %c3_i32, %c8_i32_36 : i32
    %123 = tpu.assume_multiple %122, 8 : i32
    %c8_i32_37 = arith.constant 8 : i32
    %124 = arith.muli %121, %c8_i32_37 : i32
    %125 = tpu.assume_multiple %124, 8 : i32
    %126 = arith.truncf %114 : vector<16x32xf32> to vector<16x32xbf16>
    %cst_38 = arith.constant dense<0.000000e+00> : vector<16x256xf32>
    %127 = tpu.matmul %126, %8, %cst_38 {dimension_numbers = #tpu.dot_dimension_numbers<[1], [0], [0], [1], [0, 0, 1, 1], [], []>} : vector<16x32xbf16>, vector<32x256xbf16>, vector<16x256xf32> -> vector<16x256xf32>
    %128 = arith.index_cast %123 : i32 to index
    %c0_39 = arith.constant 0 : index
    %129 = vector.load %arg9[%128, %c0_39] : memref<64x256xf32, #tpu.memory_space<vmem>>, vector<8x128xf32>
    %130 = vector.extract_strided_slice %127 {offsets = [0, 0], sizes = [8, 128], strides = [1, 1]} : vector<16x256xf32> to vector<8x128xf32>
    %131 = arith.addf %129, %130 : vector<8x128xf32>
    %132 = arith.index_cast %125 : i32 to index
    %c128_40 = arith.constant 128 : index
    %133 = vector.load %arg9[%132, %c128_40] : memref<64x256xf32, #tpu.memory_space<vmem>>, vector<8x128xf32>
    %134 = vector.extract_strided_slice %127 {offsets = [8, 128], sizes = [8, 128], strides = [1, 1]} : vector<16x256xf32> to vector<8x128xf32>
    %135 = arith.addf %133, %134 : vector<8x128xf32>
    %136 = tpu.concatenate %131, %135 in 0 : vector<8x128xf32>, vector<8x128xf32> -> vector<16x128xf32>
    %137 = arith.negf %136 : vector<16x128xf32>
    %138 = math.exp %137 : vector<16x128xf32>
    %cst_41 = arith.constant 1.000000e+00 : f32
    %139 = vector.broadcast %cst_41 : f32 to vector<16x128xf32>
    %140 = arith.addf %139, %138 : vector<16x128xf32>
    %141 = arith.divf %139, %140 : vector<16x128xf32>
    %142 = vector.extract_strided_slice %141 {offsets = [0, 0], sizes = [16, 32], strides = [1, 1]} : vector<16x128xf32> to vector<16x32xf32>
    %143 = vector.extract_strided_slice %141 {offsets = [0, 32], sizes = [16, 32], strides = [1, 1]} : vector<16x128xf32> to vector<16x32xf32>
    %144 = vector.extract_strided_slice %141 {offsets = [0, 96], sizes = [16, 32], strides = [1, 1]} : vector<16x128xf32> to vector<16x32xf32>
    %145 = vector.extract_strided_slice %136 {offsets = [0, 64], sizes = [16, 32], strides = [1, 1]} : vector<16x128xf32> to vector<16x32xf32>
    %146 = math.tanh %145 : vector<16x32xf32>
    %147 = arith.mulf %143, %112 : vector<16x32xf32>
    %148 = arith.mulf %142, %146 : vector<16x32xf32>
    %149 = arith.addf %147, %148 : vector<16x32xf32>
    %150 = math.tanh %149 : vector<16x32xf32>
    %151 = arith.mulf %144, %150 : vector<16x32xf32>
    %152 = vector.extract_strided_slice %151 {offsets = [0, 0], sizes = [8, 32], strides = [1, 1]} : vector<16x32xf32> to vector<8x32xf32>
    %153 = arith.index_cast %123 : i32 to index
    %c0_42 = arith.constant 0 : index
    %154 = vector.load %arg10[%153, %c0_42] : memref<64x32xf32, #tpu.memory_space<vmem>>, vector<8x32xf32>
    tpu.vector_store %arg10[%153, %c0_42], %152 {strides = array<i32>} : memref<64x32xf32, #tpu.memory_space<vmem>>, vector<8x32xf32>,
    %155 = vector.extract_strided_slice %151 {offsets = [8, 0], sizes = [8, 32], strides = [1, 1]} : vector<16x32xf32> to vector<8x32xf32>
    %156 = arith.index_cast %125 : i32 to index
    %c0_43 = arith.constant 0 : index
    %157 = vector.load %arg11[%156, %c0_43] : memref<64x32xf32, #tpu.memory_space<vmem>>, vector<8x32xf32>
    tpu.vector_store %arg11[%156, %c0_43], %155 {strides = array<i32>} : memref<64x32xf32, #tpu.memory_space<vmem>>, vector<8x32xf32>,
    %c4_i32 = arith.constant 4 : i32
    %c7_i32_44 = arith.constant 7 : i32
    %158 = arith.subi %c7_i32_44, %c4_i32 : i32
    %c8_i32_45 = arith.constant 8 : i32
    %159 = arith.muli %c4_i32, %c8_i32_45 : i32
    %160 = tpu.assume_multiple %159, 8 : i32
    %c8_i32_46 = arith.constant 8 : i32
    %161 = arith.muli %158, %c8_i32_46 : i32
    %162 = tpu.assume_multiple %161, 8 : i32
    %163 = arith.truncf %151 : vector<16x32xf32> to vector<16x32xbf16>
    %cst_47 = arith.constant dense<0.000000e+00> : vector<16x256xf32>
    %164 = tpu.matmul %163, %8, %cst_47 {dimension_numbers = #tpu.dot_dimension_numbers<[1], [0], [0], [1], [0, 0, 1, 1], [], []>} : vector<16x32xbf16>, vector<32x256xbf16>, vector<16x256xf32> -> vector<16x256xf32>
    %165 = arith.index_cast %160 : i32 to index
    %c0_48 = arith.constant 0 : index
    %166 = vector.load %arg9[%165, %c0_48] : memref<64x256xf32, #tpu.memory_space<vmem>>, vector<8x128xf32>
    %167 = vector.extract_strided_slice %164 {offsets = [0, 0], sizes = [8, 128], strides = [1, 1]} : vector<16x256xf32> to vector<8x128xf32>
    %168 = arith.addf %166, %167 : vector<8x128xf32>
    %169 = arith.index_cast %162 : i32 to index
    %c128_49 = arith.constant 128 : index
    %170 = vector.load %arg9[%169, %c128_49] : memref<64x256xf32, #tpu.memory_space<vmem>>, vector<8x128xf32>
    %171 = vector.extract_strided_slice %164 {offsets = [8, 128], sizes = [8, 128], strides = [1, 1]} : vector<16x256xf32> to vector<8x128xf32>
    %172 = arith.addf %170, %171 : vector<8x128xf32>
    %173 = tpu.concatenate %168, %172 in 0 : vector<8x128xf32>, vector<8x128xf32> -> vector<16x128xf32>
    %174 = arith.negf %173 : vector<16x128xf32>
    %175 = math.exp %174 : vector<16x128xf32>
    %cst_50 = arith.constant 1.000000e+00 : f32
    %176 = vector.broadcast %cst_50 : f32 to vector<16x128xf32>
    %177 = arith.addf %176, %175 : vector<16x128xf32>
    %178 = arith.divf %176, %177 : vector<16x128xf32>
    %179 = vector.extract_strided_slice %178 {offsets = [0, 0], sizes = [16, 32], strides = [1, 1]} : vector<16x128xf32> to vector<16x32xf32>
    %180 = vector.extract_strided_slice %178 {offsets = [0, 32], sizes = [16, 32], strides = [1, 1]} : vector<16x128xf32> to vector<16x32xf32>
    %181 = vector.extract_strided_slice %178 {offsets = [0, 96], sizes = [16, 32], strides = [1, 1]} : vector<16x128xf32> to vector<16x32xf32>
    %182 = vector.extract_strided_slice %173 {offsets = [0, 64], sizes = [16, 32], strides = [1, 1]} : vector<16x128xf32> to vector<16x32xf32>
    %183 = math.tanh %182 : vector<16x32xf32>
    %184 = arith.mulf %180, %149 : vector<16x32xf32>
    %185 = arith.mulf %179, %183 : vector<16x32xf32>
    %186 = arith.addf %184, %185 : vector<16x32xf32>
    %187 = math.tanh %186 : vector<16x32xf32>
    %188 = arith.mulf %181, %187 : vector<16x32xf32>
    %189 = vector.extract_strided_slice %188 {offsets = [0, 0], sizes = [8, 32], strides = [1, 1]} : vector<16x32xf32> to vector<8x32xf32>
    %190 = arith.index_cast %160 : i32 to index
    %c0_51 = arith.constant 0 : index
    %191 = vector.load %arg10[%190, %c0_51] : memref<64x32xf32, #tpu.memory_space<vmem>>, vector<8x32xf32>
    tpu.vector_store %arg10[%190, %c0_51], %189 {strides = array<i32>} : memref<64x32xf32, #tpu.memory_space<vmem>>, vector<8x32xf32>,
    %192 = vector.extract_strided_slice %188 {offsets = [8, 0], sizes = [8, 32], strides = [1, 1]} : vector<16x32xf32> to vector<8x32xf32>
    %193 = arith.index_cast %162 : i32 to index
    %c0_52 = arith.constant 0 : index
    %194 = vector.load %arg11[%193, %c0_52] : memref<64x32xf32, #tpu.memory_space<vmem>>, vector<8x32xf32>
    tpu.vector_store %arg11[%193, %c0_52], %192 {strides = array<i32>} : memref<64x32xf32, #tpu.memory_space<vmem>>, vector<8x32xf32>,
    %c5_i32 = arith.constant 5 : i32
    %c7_i32_53 = arith.constant 7 : i32
    %195 = arith.subi %c7_i32_53, %c5_i32 : i32
    %c8_i32_54 = arith.constant 8 : i32
    %196 = arith.muli %c5_i32, %c8_i32_54 : i32
    %197 = tpu.assume_multiple %196, 8 : i32
    %c8_i32_55 = arith.constant 8 : i32
    %198 = arith.muli %195, %c8_i32_55 : i32
    %199 = tpu.assume_multiple %198, 8 : i32
    %200 = arith.truncf %188 : vector<16x32xf32> to vector<16x32xbf16>
    %cst_56 = arith.constant dense<0.000000e+00> : vector<16x256xf32>
    %201 = tpu.matmul %200, %8, %cst_56 {dimension_numbers = #tpu.dot_dimension_numbers<[1], [0], [0], [1], [0, 0, 1, 1], [], []>} : vector<16x32xbf16>, vector<32x256xbf16>, vector<16x256xf32> -> vector<16x256xf32>
    %202 = arith.index_cast %197 : i32 to index
    %c0_57 = arith.constant 0 : index
    %203 = vector.load %arg9[%202, %c0_57] : memref<64x256xf32, #tpu.memory_space<vmem>>, vector<8x128xf32>
    %204 = vector.extract_strided_slice %201 {offsets = [0, 0], sizes = [8, 128], strides = [1, 1]} : vector<16x256xf32> to vector<8x128xf32>
    %205 = arith.addf %203, %204 : vector<8x128xf32>
    %206 = arith.index_cast %199 : i32 to index
    %c128_58 = arith.constant 128 : index
    %207 = vector.load %arg9[%206, %c128_58] : memref<64x256xf32, #tpu.memory_space<vmem>>, vector<8x128xf32>
    %208 = vector.extract_strided_slice %201 {offsets = [8, 128], sizes = [8, 128], strides = [1, 1]} : vector<16x256xf32> to vector<8x128xf32>
    %209 = arith.addf %207, %208 : vector<8x128xf32>
    %210 = tpu.concatenate %205, %209 in 0 : vector<8x128xf32>, vector<8x128xf32> -> vector<16x128xf32>
    %211 = arith.negf %210 : vector<16x128xf32>
    %212 = math.exp %211 : vector<16x128xf32>
    %cst_59 = arith.constant 1.000000e+00 : f32
    %213 = vector.broadcast %cst_59 : f32 to vector<16x128xf32>
    %214 = arith.addf %213, %212 : vector<16x128xf32>
    %215 = arith.divf %213, %214 : vector<16x128xf32>
    %216 = vector.extract_strided_slice %215 {offsets = [0, 0], sizes = [16, 32], strides = [1, 1]} : vector<16x128xf32> to vector<16x32xf32>
    %217 = vector.extract_strided_slice %215 {offsets = [0, 32], sizes = [16, 32], strides = [1, 1]} : vector<16x128xf32> to vector<16x32xf32>
    %218 = vector.extract_strided_slice %215 {offsets = [0, 96], sizes = [16, 32], strides = [1, 1]} : vector<16x128xf32> to vector<16x32xf32>
    %219 = vector.extract_strided_slice %210 {offsets = [0, 64], sizes = [16, 32], strides = [1, 1]} : vector<16x128xf32> to vector<16x32xf32>
    %220 = math.tanh %219 : vector<16x32xf32>
    %221 = arith.mulf %217, %186 : vector<16x32xf32>
    %222 = arith.mulf %216, %220 : vector<16x32xf32>
    %223 = arith.addf %221, %222 : vector<16x32xf32>
    %224 = math.tanh %223 : vector<16x32xf32>
    %225 = arith.mulf %218, %224 : vector<16x32xf32>
    %226 = vector.extract_strided_slice %225 {offsets = [0, 0], sizes = [8, 32], strides = [1, 1]} : vector<16x32xf32> to vector<8x32xf32>
    %227 = arith.index_cast %197 : i32 to index
    %c0_60 = arith.constant 0 : index
    %228 = vector.load %arg10[%227, %c0_60] : memref<64x32xf32, #tpu.memory_space<vmem>>, vector<8x32xf32>
    tpu.vector_store %arg10[%227, %c0_60], %226 {strides = array<i32>} : memref<64x32xf32, #tpu.memory_space<vmem>>, vector<8x32xf32>,
    %229 = vector.extract_strided_slice %225 {offsets = [8, 0], sizes = [8, 32], strides = [1, 1]} : vector<16x32xf32> to vector<8x32xf32>
    %230 = arith.index_cast %199 : i32 to index
    %c0_61 = arith.constant 0 : index
    %231 = vector.load %arg11[%230, %c0_61] : memref<64x32xf32, #tpu.memory_space<vmem>>, vector<8x32xf32>
    tpu.vector_store %arg11[%230, %c0_61], %229 {strides = array<i32>} : memref<64x32xf32, #tpu.memory_space<vmem>>, vector<8x32xf32>,
    %c6_i32 = arith.constant 6 : i32
    %c7_i32_62 = arith.constant 7 : i32
    %232 = arith.subi %c7_i32_62, %c6_i32 : i32
    %c8_i32_63 = arith.constant 8 : i32
    %233 = arith.muli %c6_i32, %c8_i32_63 : i32
    %234 = tpu.assume_multiple %233, 8 : i32
    %c8_i32_64 = arith.constant 8 : i32
    %235 = arith.muli %232, %c8_i32_64 : i32
    %236 = tpu.assume_multiple %235, 8 : i32
    %237 = arith.truncf %225 : vector<16x32xf32> to vector<16x32xbf16>
    %cst_65 = arith.constant dense<0.000000e+00> : vector<16x256xf32>
    %238 = tpu.matmul %237, %8, %cst_65 {dimension_numbers = #tpu.dot_dimension_numbers<[1], [0], [0], [1], [0, 0, 1, 1], [], []>} : vector<16x32xbf16>, vector<32x256xbf16>, vector<16x256xf32> -> vector<16x256xf32>
    %239 = arith.index_cast %234 : i32 to index
    %c0_66 = arith.constant 0 : index
    %240 = vector.load %arg9[%239, %c0_66] : memref<64x256xf32, #tpu.memory_space<vmem>>, vector<8x128xf32>
    %241 = vector.extract_strided_slice %238 {offsets = [0, 0], sizes = [8, 128], strides = [1, 1]} : vector<16x256xf32> to vector<8x128xf32>
    %242 = arith.addf %240, %241 : vector<8x128xf32>
    %243 = arith.index_cast %236 : i32 to index
    %c128_67 = arith.constant 128 : index
    %244 = vector.load %arg9[%243, %c128_67] : memref<64x256xf32, #tpu.memory_space<vmem>>, vector<8x128xf32>
    %245 = vector.extract_strided_slice %238 {offsets = [8, 128], sizes = [8, 128], strides = [1, 1]} : vector<16x256xf32> to vector<8x128xf32>
    %246 = arith.addf %244, %245 : vector<8x128xf32>
    %247 = tpu.concatenate %242, %246 in 0 : vector<8x128xf32>, vector<8x128xf32> -> vector<16x128xf32>
    %248 = arith.negf %247 : vector<16x128xf32>
    %249 = math.exp %248 : vector<16x128xf32>
    %cst_68 = arith.constant 1.000000e+00 : f32
    %250 = vector.broadcast %cst_68 : f32 to vector<16x128xf32>
    %251 = arith.addf %250, %249 : vector<16x128xf32>
    %252 = arith.divf %250, %251 : vector<16x128xf32>
    %253 = vector.extract_strided_slice %252 {offsets = [0, 0], sizes = [16, 32], strides = [1, 1]} : vector<16x128xf32> to vector<16x32xf32>
    %254 = vector.extract_strided_slice %252 {offsets = [0, 32], sizes = [16, 32], strides = [1, 1]} : vector<16x128xf32> to vector<16x32xf32>
    %255 = vector.extract_strided_slice %252 {offsets = [0, 96], sizes = [16, 32], strides = [1, 1]} : vector<16x128xf32> to vector<16x32xf32>
    %256 = vector.extract_strided_slice %247 {offsets = [0, 64], sizes = [16, 32], strides = [1, 1]} : vector<16x128xf32> to vector<16x32xf32>
    %257 = math.tanh %256 : vector<16x32xf32>
    %258 = arith.mulf %254, %223 : vector<16x32xf32>
    %259 = arith.mulf %253, %257 : vector<16x32xf32>
    %260 = arith.addf %258, %259 : vector<16x32xf32>
    %261 = math.tanh %260 : vector<16x32xf32>
    %262 = arith.mulf %255, %261 : vector<16x32xf32>
    %263 = vector.extract_strided_slice %262 {offsets = [0, 0], sizes = [8, 32], strides = [1, 1]} : vector<16x32xf32> to vector<8x32xf32>
    %264 = arith.index_cast %234 : i32 to index
    %c0_69 = arith.constant 0 : index
    %265 = vector.load %arg10[%264, %c0_69] : memref<64x32xf32, #tpu.memory_space<vmem>>, vector<8x32xf32>
    tpu.vector_store %arg10[%264, %c0_69], %263 {strides = array<i32>} : memref<64x32xf32, #tpu.memory_space<vmem>>, vector<8x32xf32>,
    %266 = vector.extract_strided_slice %262 {offsets = [8, 0], sizes = [8, 32], strides = [1, 1]} : vector<16x32xf32> to vector<8x32xf32>
    %267 = arith.index_cast %236 : i32 to index
    %c0_70 = arith.constant 0 : index
    %268 = vector.load %arg11[%267, %c0_70] : memref<64x32xf32, #tpu.memory_space<vmem>>, vector<8x32xf32>
    tpu.vector_store %arg11[%267, %c0_70], %266 {strides = array<i32>} : memref<64x32xf32, #tpu.memory_space<vmem>>, vector<8x32xf32>,
    %c7_i32_71 = arith.constant 7 : i32
    %c7_i32_72 = arith.constant 7 : i32
    %269 = arith.subi %c7_i32_72, %c7_i32_71 : i32
    %c8_i32_73 = arith.constant 8 : i32
    %270 = arith.muli %c7_i32_71, %c8_i32_73 : i32
    %271 = tpu.assume_multiple %270, 8 : i32
    %c8_i32_74 = arith.constant 8 : i32
    %272 = arith.muli %269, %c8_i32_74 : i32
    %273 = tpu.assume_multiple %272, 8 : i32
    %274 = arith.truncf %262 : vector<16x32xf32> to vector<16x32xbf16>
    %cst_75 = arith.constant dense<0.000000e+00> : vector<16x256xf32>
    %275 = tpu.matmul %274, %8, %cst_75 {dimension_numbers = #tpu.dot_dimension_numbers<[1], [0], [0], [1], [0, 0, 1, 1], [], []>} : vector<16x32xbf16>, vector<32x256xbf16>, vector<16x256xf32> -> vector<16x256xf32>
    %276 = arith.index_cast %271 : i32 to index
    %c0_76 = arith.constant 0 : index
    %277 = vector.load %arg9[%276, %c0_76] : memref<64x256xf32, #tpu.memory_space<vmem>>, vector<8x128xf32>
    %278 = vector.extract_strided_slice %275 {offsets = [0, 0], sizes = [8, 128], strides = [1, 1]} : vector<16x256xf32> to vector<8x128xf32>
    %279 = arith.addf %277, %278 : vector<8x128xf32>
    %280 = arith.index_cast %273 : i32 to index
    %c128_77 = arith.constant 128 : index
    %281 = vector.load %arg9[%280, %c128_77] : memref<64x256xf32, #tpu.memory_space<vmem>>, vector<8x128xf32>
    %282 = vector.extract_strided_slice %275 {offsets = [8, 128], sizes = [8, 128], strides = [1, 1]} : vector<16x256xf32> to vector<8x128xf32>
    %283 = arith.addf %281, %282 : vector<8x128xf32>
    %284 = tpu.concatenate %279, %283 in 0 : vector<8x128xf32>, vector<8x128xf32> -> vector<16x128xf32>
    %285 = arith.negf %284 : vector<16x128xf32>
    %286 = math.exp %285 : vector<16x128xf32>
    %cst_78 = arith.constant 1.000000e+00 : f32
    %287 = vector.broadcast %cst_78 : f32 to vector<16x128xf32>
    %288 = arith.addf %287, %286 : vector<16x128xf32>
    %289 = arith.divf %287, %288 : vector<16x128xf32>
    %290 = vector.extract_strided_slice %289 {offsets = [0, 0], sizes = [16, 32], strides = [1, 1]} : vector<16x128xf32> to vector<16x32xf32>
    %291 = vector.extract_strided_slice %289 {offsets = [0, 32], sizes = [16, 32], strides = [1, 1]} : vector<16x128xf32> to vector<16x32xf32>
    %292 = vector.extract_strided_slice %289 {offsets = [0, 96], sizes = [16, 32], strides = [1, 1]} : vector<16x128xf32> to vector<16x32xf32>
    %293 = vector.extract_strided_slice %284 {offsets = [0, 64], sizes = [16, 32], strides = [1, 1]} : vector<16x128xf32> to vector<16x32xf32>
    %294 = math.tanh %293 : vector<16x32xf32>
    %295 = arith.mulf %291, %260 : vector<16x32xf32>
    %296 = arith.mulf %290, %294 : vector<16x32xf32>
    %297 = arith.addf %295, %296 : vector<16x32xf32>
    %298 = math.tanh %297 : vector<16x32xf32>
    %299 = arith.mulf %292, %298 : vector<16x32xf32>
    %300 = vector.extract_strided_slice %299 {offsets = [0, 0], sizes = [8, 32], strides = [1, 1]} : vector<16x32xf32> to vector<8x32xf32>
    %301 = arith.index_cast %271 : i32 to index
    %c0_79 = arith.constant 0 : index
    %302 = vector.load %arg10[%301, %c0_79] : memref<64x32xf32, #tpu.memory_space<vmem>>, vector<8x32xf32>
    tpu.vector_store %arg10[%301, %c0_79], %300 {strides = array<i32>} : memref<64x32xf32, #tpu.memory_space<vmem>>, vector<8x32xf32>,
    %303 = vector.extract_strided_slice %299 {offsets = [8, 0], sizes = [8, 32], strides = [1, 1]} : vector<16x32xf32> to vector<8x32xf32>
    %304 = arith.index_cast %273 : i32 to index
    %c0_80 = arith.constant 0 : index
    %305 = vector.load %arg11[%304, %c0_80] : memref<64x32xf32, #tpu.memory_space<vmem>>, vector<8x32xf32>
    tpu.vector_store %arg11[%304, %c0_80], %303 {strides = array<i32>} : memref<64x32xf32, #tpu.memory_space<vmem>>, vector<8x32xf32>,
    %c8_i32_81 = arith.constant 8 : i32
    %c0_82 = arith.constant 0 : index
    %c0_83 = arith.constant 0 : index
    %306 = vector.load %arg10[%c0_82, %c0_83] : memref<64x32xf32, #tpu.memory_space<vmem>>, vector<64x32xf32>
    %307 = arith.truncf %306 : vector<64x32xf32> to vector<64x32xbf16>
    %c0_84 = arith.constant 0 : index
    %c0_85 = arith.constant 0 : index
    %308 = vector.load %arg5[%c0_84, %c0_85] : memref<32x64xbf16, #tpu.memory_space<vmem>>, vector<32x64xbf16>
    %cst_86 = arith.constant dense<0.000000e+00> : vector<64x64xf32>
    %309 = tpu.matmul %307, %308, %cst_86 {dimension_numbers = #tpu.dot_dimension_numbers<[1], [0], [0], [1], [0, 0, 1, 1], [], []>} : vector<64x32xbf16>, vector<32x64xbf16>, vector<64x64xf32> -> vector<64x64xf32>
    %c0_87 = arith.constant 0 : index
    %c0_88 = arith.constant 0 : index
    %310 = vector.load %arg11[%c0_87, %c0_88] : memref<64x32xf32, #tpu.memory_space<vmem>>, vector<64x32xf32>
    %311 = arith.truncf %310 : vector<64x32xf32> to vector<64x32xbf16>
    %c0_89 = arith.constant 0 : index
    %c0_90 = arith.constant 0 : index
    %312 = vector.load %arg6[%c0_89, %c0_90] : memref<32x64xbf16, #tpu.memory_space<vmem>>, vector<32x64xbf16>
    %cst_91 = arith.constant dense<0.000000e+00> : vector<64x64xf32>
    %313 = tpu.matmul %311, %312, %cst_91 {dimension_numbers = #tpu.dot_dimension_numbers<[1], [0], [0], [1], [0, 0, 1, 1], [], []>} : vector<64x32xbf16>, vector<32x64xbf16>, vector<64x64xf32> -> vector<64x64xf32>
    %314 = arith.addf %309, %313 : vector<64x64xf32>
    %c0_92 = arith.constant 0 : index
    %c0_93 = arith.constant 0 : index
    %315 = vector.load %arg7[%c0_92, %c0_93] : memref<1x64xf32, #tpu.memory_space<vmem>>, vector<1x64xf32>
    %316 = vector.broadcast %315 : vector<1x64xf32> to vector<64x64xf32>
    %317 = arith.addf %314, %316 : vector<64x64xf32>
    %318 = vector.shape_cast %317 : vector<64x64xf32> to vector<8x8x64xf32>
    %c0_94 = arith.constant 0 : index
    %c0_95 = arith.constant 0 : index
    %c0_96 = arith.constant 0 : index
    %319 = vector.load %arg8[%c0_94, %c0_95, %c0_96] : memref<8x8x64xf32, #tpu.memory_space<vmem>>, vector<8x8x64xf32>
    tpu.vector_store %arg8[%c0_94, %c0_95, %c0_96], %318 {strides = array<i32>} : memref<8x8x64xf32, #tpu.memory_space<vmem>>, vector<8x8x64xf32>,
    return
  }
  func.func @transform_0(%arg0: i32) -> (i32, i32, i32) {
    %c0_i32 = arith.constant 0 : i32
    %c0_i32_0 = arith.constant 0 : i32
    %c0_i32_1 = arith.constant 0 : i32
    return %c0_i32, %arg0, %c0_i32_0 : i32, i32, i32
  }
  func.func @transform_1(%arg0: i32) -> (i32, i32) {
    %c0_i32 = arith.constant 0 : i32
    %c0_i32_0 = arith.constant 0 : i32
    %c0_i32_1 = arith.constant 0 : i32
    return %c0_i32, %c0_i32_0 : i32, i32
  }
  func.func @transform_2(%arg0: i32) -> (i32, i32) {
    %c0_i32 = arith.constant 0 : i32
    %c0_i32_0 = arith.constant 0 : i32
    %c0_i32_1 = arith.constant 0 : i32
    return %c0_i32, %c0_i32_0 : i32, i32
  }
  func.func @transform_3(%arg0: i32) -> (i32, i32) {
    %c0_i32 = arith.constant 0 : i32
    %c0_i32_0 = arith.constant 0 : i32
    %c0_i32_1 = arith.constant 0 : i32
    return %c0_i32, %c0_i32_0 : i32, i32
  }
  func.func @transform_4(%arg0: i32) -> (i32, i32) {
    %c0_i32 = arith.constant 0 : i32
    %c0_i32_0 = arith.constant 0 : i32
    %c0_i32_1 = arith.constant 0 : i32
    return %c0_i32, %c0_i32_0 : i32, i32
  }
  func.func @transform_5(%arg0: i32) -> (i32, i32) {
    %c0_i32 = arith.constant 0 : i32
    %c0_i32_0 = arith.constant 0 : i32
    %c0_i32_1 = arith.constant 0 : i32
    return %c0_i32, %c0_i32_0 : i32, i32
  }
  func.func @transform_6(%arg0: i32) -> (i32, i32) {
    %c0_i32 = arith.constant 0 : i32
    %c0_i32_0 = arith.constant 0 : i32
    %c0_i32_1 = arith.constant 0 : i32
    return %c0_i32, %c0_i32_0 : i32, i32
  }
  func.func @transform_7(%arg0: i32) -> (i32, i32, i32) {
    %c0_i32 = arith.constant 0 : i32
    %c0_i32_0 = arith.constant 0 : i32
    %c0_i32_1 = arith.constant 0 : i32
    return %c0_i32, %arg0, %c0_i32_0 : i32, i32, i32
  }
}

</mosaic_0001>

<bundles_post_ra>
// kernel: tpu_custom_call.1
= control target key start
LH: loop header
LB: loop body
LE: loop exit
PB: predicated region body
PF: predicated region fallthrough
CT: control target
= control target key end

     0   :  { %s2929_s0 = inlined_call_operand.hbm [shape: bf16[8,16,16], index: 0, kind: input, shape index: {}]   ;;  %s2930_s1 = inlined_call_operand.hbm [shape: bf16[16,256], index: 1, kind: input, shape index: {}]   ;;  %s2931_s2 = inlined_call_operand.vmem [shape: f32[1,256], index: 2, kind: input, shape index: {}]   ;;  %s2932_s3 = inlined_call_operand.hbm [shape: bf16[32,256], index: 3, kind: input, shape index: {}]   ;;  %s2933_s4 = inlined_call_operand.hbm [shape: bf16[32,64], index: 4, kind: input, shape index: {}]   ;;  %s2934_s5 = inlined_call_operand.vmem [shape: bf16[32,64], index: 5, kind: input, shape index: {}]   ;;  %s2935_s6 = inlined_call_operand.vmem [shape: f32[1,64], index: 6, kind: input, shape index: {}]   ;;  %s2936_s7 = inlined_call_operand.hbm [shape: f32[8,16,64], index: 7, kind: output, shape index: {}]  }
   0x1   :  { %2946 = sst [smem:[#allocation22_spill]] %s2930_s1 }
   0x2   :  { %12 = vsyncpa [#allocation6], 0 }
   0x3   :  { %14 = vsyncpa [#allocation6 + $0x1], 0 }
   0x4   :  { %15 = vsyncpa [#allocation9], 0 }
   0x5   :  { %16 = vsyncpa [#allocation12], 0 }
   0x6   :  { %17 = vsyncpa [#allocation7], 0 }
   0x7   :  { %19 = vsyncpa [#allocation7 + $0x1], 0  ;;  %s2381_s24 = smov 0   ;;  %s2383_s25 = smov 0  }
   0x8   :  { %s2385_s26 = smov 0   ;;  %s2387_s27 = smov 0  }
   0x9 LB: > { %2947 = sst [smem:[#allocation18_spill]] %s2312_s24  ;;  %s2402_s28 = sadd.s32 4294967295, %s2324_s27   ;;  %s2324_s27 = sphi %s2387_s27, %s2974_s27   ;;  %s2320_s26 = sphi %s2385_s26, %s2978_s26   ;;  %s2316_s25 = sphi %s2383_s25, %s2977_s25   ;;  %s2312_s24 = sphi %s2381_s24, %s2976_s24  }
   0xa   : > { %s1790_s29 = sadd.s32 4294967294, %s2324_s27   ;;  %s2406_s30 = sadd.s32 1, %s2324_s27  }
   0xb   : > { %2948 = sst [smem:[#allocation19_spill]] %s2406_s30  ;;  %s32_s8 = sadd.s32 1, %s2320_s26 }
   0xc   : > { %s29_s9 = ssub.s32 %s2324_s27, %s2406_s30  ;;  %p39_p0 = scmp.ne.s32.totalorder %s2320_s26, %s2316_s25 }
   0xd   : > { %p30_p1 = scmp.eq.s32.totalorder %s29_s9, 0  ;;  %p40_p2 = scmp.eq.s32.totalorder %s2324_s27, 0 }
   0xe   : > { %p45_p3 = scmp.ne.s32.totalorder %s2316_s25, %s2312_s24  ;;  %p2937_p4 = scmp.eq.s32.totalorder %s2402_s28, 0 }
   0xf   : > { %s2418_s10 = scalar_select %p30_p1, %s2320_s26, %s32_s8  }
  0x10   : > { %p2420_p5 = por %p40_p2, %p39_p0  ;;  %p2426_p6 = por %p2937_p4, %p45_p3 }
  0x11   : > { %2949 = sst [smem:[#allocation20_spill]] %s2418_s10  ;;  %p195_p7 = scmp.eq.s32.totalorder %s2402_s28, 1 }
  0x12   : > { %s2950_s11 = scalar_select %p2420_p5, 1, 0 }
  0x13   : > { %s2951_s12 = scalar_select %p2426_p6, 1, 0 }
  0x14   : > { %p201_p8 = scmp.eq.s32.totalorder %s1790_s29, 1  ;;  %p1791_p9 = scmp.ge.s32.totalorder %s2324_s27, 1 }
  0x15   : > { %p208_p10 = scmp.lt.s32.totalorder %s2324_s27, 3  ;;  %p2433_p11 = por %p195_p7, %p39_p0 }
  0x16   : > { %p2437_p12 = por %p201_p8, %p45_p3  ;;  %s2326_s16 = smov [#allocation8]  }
  0x17   : > { %s2952_s13 = scalar_select %p2433_p11, 1, 0 }
  0x18   : > { %s2953_s14 = scalar_select %p2437_p12, 1, 0 }
  0x19   : > { %p2441_p13 = pnand %p1791_p9, %p208_p10  ;;  %s220_s17 = sshll.u32 %s2326_s16, 4  ;;  %s221_s17 = int_to_ptr.vmem [resolvable:$true] %s220_s17 }
  0x1a   : > { %2954 = sst [smem:[#allocation21_spill]] %s2953_s14  ;;  %s2327_s19 = smov [#allocation10]  }
  0x1b   : > { %s2955_s15 = scalar_select %p2441_p13, 1, 0 }
  0x1c   : > { %p1920_p1 = pneg %p2441_p13  ;;  %s236_s20 = sshll.u32 %s2327_s19, 4  ;;  %s237_s20 = int_to_ptr.vmem [resolvable:$true] %s236_s20 }
  0x1d   : > { %s2957_s1 = sld [smem:[#allocation22_spill]] }
  0x1e   : > { %p2449_p2 = pnand %p1920_p1, %p2937_p4 }
  0x20   : > { %p2463_p8 = pneg %p2449_p2 }
  0x23   : > { %s2136_s23 = scalar_lea.hbm %s2957_s1, 256 }
  0x24   : > { %p2137_p7 = scmp.ne.s32.totalorder %s2957_s1, %s2136_s23  ;;  %p2143_p1 = scmp.lt.u32.totalorder %s2136_s23, %s2957_s1 }
  0x26   : > { %p2139_p9 = pnand %p2463_p8, %p2137_p7 }
  0x28   : > { %p2140_p10 = pneg %p2139_p9 }
  0x2a   : > { %p2145_p0 = pnand %p2143_p1, %p2140_p10 }
  0x2c   : > { %2148 = shalt.err (!%p2145_p0)
}
  0x2d   : > { %s2149_s19 = scalar_lea.vmem %s221_s17, 256  ;;  %p2157_p11 = scmp.lt.s32.totalorder %s221_s17, %s221_s17 }
  0x2e   : > { %p2150_p4 = scmp.ne.s32.totalorder %s221_s17, %s2149_s19  ;;  %p2158_p6 = scmp.lt.s32.totalorder %s2149_s19, %s2149_s19 }
  0x30   : > { %p2152_p3 = pnand %p2150_p4, %p2463_p8  ;;  %p2159_p13 = por %p2158_p6, %p2157_p11 }
  0x32   : > { %p2153_p12 = pneg %p2152_p3 }
  0x34   : > { %p2160_p5 = pnand %p2159_p13, %p2153_p12 }
  0x36   : > { %2163 = shalt.err (!%p2160_p5)
}
  0x37   : > { %s2328_s21 = smov 128   ;;  %s2329_s10 = smov 8  }
  0x38   : > { %1923 = dma.hbm_to_vmem [thread:$0]  (!%p2449_p2), %s2957_s1, 256, %s221_s17, [#allocation9], %s2328_s21, %s2328_s21, %s2329_s10  }
  0x39   : > { %p2959_p4 = scmp.ne.s32.totalorder %s2950_s11, 0  ;;  %p2960_p0 = scmp.lt.s32.totalorder %s2324_s27, 2 }
  0x3a   : > { %s2164_s19 = scalar_lea.hbm %s2932_s3, 512 }
  0x3b   : > { %p2485_p3 = pnand %p2960_p0, %p2959_p4  ;;  %p2165_p5 = scmp.ne.s32.totalorder %s2932_s3, %s2164_s19 }
  0x3c   : > { %p2171_p12 = scmp.lt.u32.totalorder %s2164_s19, %s2932_s3 }
  0x3d   : > { %s2961_s29 = scalar_select %p2485_p3, 1, 0 }
  0x3e   : > { %p2167_p6 = pnand %p2165_p5, %p2463_p8 }
  0x40   : > { %p2168_p11 = pneg %p2167_p6 }
  0x42   : > { %p2173_p13 = pnand %p2171_p12, %p2168_p11 }
  0x44   : > { %2176 = shalt.err (!%p2173_p13)
}
  0x45   : > { %s2177_s11 = scalar_lea.vmem %s237_s20, 512  ;;  %p2185_p1 = scmp.lt.s32.totalorder %s237_s20, %s237_s20 }
  0x46   : > { %p2178_p7 = scmp.ne.s32.totalorder %s237_s20, %s2177_s11  ;;  %p2186_p4 = scmp.lt.s32.totalorder %s2177_s11, %s2177_s11 }
  0x48   : > { %p2180_p9 = pnand %p2178_p7, %p2463_p8  ;;  %p2187_p0 = por %p2186_p4, %p2185_p1 }
  0x4a   : > { %p2181_p10 = pneg %p2180_p9 }
  0x4c   : > { %p2188_p3 = pnand %p2187_p0, %p2181_p10 }
  0x4e   : > { %2191 = shalt.err (!%p2188_p3)
}
  0x4f   : > { %1926 = dma.hbm_to_vmem [thread:$0]  (!%p2449_p2), %s2932_s3, 512, %s237_s20, [#allocation9], %s2328_s21, %s2328_s21, %s2329_s10  }
  0x50   : > { %s2330_s23 = smov [#allocation11]   ;;  %s2192_s22 = scalar_lea.hbm %s2933_s4, 256 }
  0x51   : > { %s249_s8 = sshll.u32 %s2330_s23, 4  ;;  %p2193_p3 = scmp.ne.s32.totalorder %s2933_s4, %s2192_s22  ;;  %s250_s8 = int_to_ptr.vmem [resolvable:$true] %s249_s8 }
  0x52   : > { %p2199_p11 = scmp.lt.u32.totalorder %s2192_s22, %s2933_s4 }
  0x53   : > { %p2195_p5 = pnand %p2193_p3, %p2463_p8 }
  0x55   : > { %p2196_p6 = pneg %p2195_p5 }
  0x57   : > { %p2201_p12 = pnand %p2199_p11, %p2196_p6 }
  0x59   : > { %2204 = shalt.err (!%p2201_p12)
}
  0x5a   : > { %s2205_s20 = scalar_lea.vmem %s250_s8, 256  ;;  %p2213_p10 = scmp.lt.s32.totalorder %s250_s8, %s250_s8 }
  0x5b   : > { %p2206_p13 = scmp.ne.s32.totalorder %s250_s8, %s2205_s20  ;;  %p2214_p1 = scmp.lt.s32.totalorder %s2205_s20, %s2205_s20 }
  0x5d   : > { %p2208_p7 = pnand %p2206_p13, %p2463_p8  ;;  %p2215_p4 = por %p2214_p1, %p2213_p10 }
  0x5f   : > { %p2209_p9 = pneg %p2208_p7 }
  0x61   : > { %p2216_p0 = pnand %p2215_p4, %p2209_p9 }
  0x63   : > { %2219 = shalt.err (!%p2216_p0)
}
  0x64   : > { %s2331_s10 = smov 64   ;;  %s2332_s1 = smov 4  }
  0x65   : > { %1929 = dma.hbm_to_vmem [thread:$0]  (!%p2449_p2), %s2933_s4, 256, %s250_s8, [#allocation12], %s2331_s10, %s2331_s10, %s2332_s1  }
  0x66   : > { %s269_s30 = sand.u32 1, %s2320_s26   ;;  %s1797_s14 = sshll.u32 %s2324_s27, 6 }
  0x67   : > { %s1796_s23 = sshll.u32 %s269_s30, 5  ;;  %s2535_s22 = scalar_lea.hbm %s2929_s0, %s1797_s14 }
  0x68   : > { %s273_s18 = scalar_lea.vmem [#allocation5], %s1796_s23  ;;  %s2539_s11 = scalar_lea.sflag [#allocation6], %s269_s30 }
  0x69   : > { %s279_s17 = sshll.u32 %s273_s18, 4  ;;  %s2220_s20 = scalar_lea.hbm %s2535_s22, 512  ;;  %s2537_s17 = int_to_ptr.vmem [resolvable:$true] %s279_s17 }
  0x6a   : > { %p2221_p2 = scmp.ne.s32.totalorder %s2535_s22, %s2220_s20  ;;  %p2962_p8 = scmp.ne.s32.totalorder %s2961_s29, 0 }
  0x6b   : > { %s2225_s9 = scalar_lea.hbm %s2929_s0, 1024  ;;  %p2226_p11 = scmp.lt.u32.totalorder %s2535_s22, %s2929_s0 }
  0x6c   : > { %p2222_p3 = pneg %p2962_p8  ;;  %p2227_p12 = scmp.lt.u32.totalorder %s2225_s9, %s2220_s20 }
  0x6d   : > { %p2229_p7 = scmp.lt.u32.totalorder %s2220_s20, %s2535_s22 }
  0x6e   : > { %p2223_p5 = pnand %p2222_p3, %p2221_p2  ;;  %p2228_p13 = por %p2227_p12, %p2226_p11 }
  0x70   : > { %p2224_p6 = pneg %p2223_p5  ;;  %p2230_p9 = por %p2229_p7, %p2228_p13 }
  0x72   : > { %p2231_p10 = pnand %p2230_p9, %p2224_p6 }
  0x74   : > { %2234 = shalt.err (!%p2231_p10)
}
  0x75   : > { %s2235_s30 = scalar_lea.vmem %s2537_s17, 512  ;;  %s2333_s23 = smov [#allocation5]  }
  0x76   : > { %p2236_p1 = scmp.ne.s32.totalorder %s2537_s17, %s2235_s30  ;;  %s2240_s19 = sshll.u32 %s2333_s23, 4  ;;  %s2241_s19 = int_to_ptr.vmem [resolvable:$false] %s2240_s19 }
  0x77   : > { %s2242_s18 = scalar_lea.vmem %s2241_s19, 1024  ;;  %p2243_p2 = scmp.lt.s32.totalorder %s2537_s17, %s2241_s19 }
  0x78   : > { %p2238_p4 = pnand %p2236_p1, %p2222_p3  ;;  %p2244_p5 = scmp.lt.s32.totalorder %s2242_s18, %s2235_s30 }
  0x7a   : > { %p2239_p0 = pneg %p2238_p4  ;;  %p2245_p11 = por %p2244_p5, %p2243_p2 }
  0x7c   : > { %p2246_p12 = pnand %p2245_p11, %p2239_p0 }
  0x7e   : > { %2249 = shalt.err (!%p2246_p12)
}
  0x7f   : > { %1933 = dma.hbm_to_vmem [thread:$0]  (!%p2962_p8), %s2535_s22, 512, %s2537_s17, %s2539_s11, %s2328_s21, %s2331_s10, %s2332_s1  }
  0x80   : > { %p2963_p3 = scmp.ne.s32.totalorder %s2955_s15, 0 }
  0x81   : > { %s2573_s20 = sand.u32 (!%p2963_p3), 1, %s2316_s25   ;;  %p2964_p6 = scmp.ne.s32.totalorder (!%p2963_p3), %s2951_s12, 0 }
  0x82   : > { %291 = sbr.rel (%p2963_p3) target bundleno = 6092 (0x17cc), region = 48  ;;  %s1799_s8 = sshll.u32 (!%p2963_p3), %s2573_s20, 5 }
  0x83   : > { %s294_s24 = scalar_lea.sflag (!%p2963_p3), [#allocation6], %s2573_s20  ;;  %s2577_s9 = scalar_lea.vmem (!%p2963_p3), [#allocation5], %s1799_s8 }
  0x89   : > { %2295 = dma.done.wait (%p2964_p6), %s294_s24, 512  }
  0x8a   : > { %2297 = vsyncadd (%p2964_p6), %s294_s24, 4294966784  ;;  %p2965_p8 = scmp.eq.s32.totalorder %s2402_s28, 0 }
  0x8c   : > { %2299 = dma.done.wait (%p2965_p8), [#allocation9], 768   ;;  %p2966_p13 = pmov %p2965_p8 }
  0x8d   : > { %p2967_p7 = pmov %p2965_p8 }
  0x8e   : > { %2301 = vsyncadd (%p2966_p13), [#allocation9], 4294966528 }
  0x8f   : > { %2303 = dma.done.wait (%p2967_p7), [#allocation12], 256   ;;  %p2968_p9 = pmov %p2967_p7 }
  0x90   : > { %v2334_v0 = vmov 0   ;;  %v1991_v1 = vld [vmem:[#allocation8 + $0x4] ss:$8 sps:$4 sm:$0xff]   ;;  %v1993_v2 = vld [vmem:[#allocation8] ss:$8 sps:$4 sm:$0xff]   ;;  %v1994_v3 = vld [vmem:[%s2577_s9 + $0x10] sm:$0xff]   ;;  %v353_v10 = vlaneseq }
  0x91   : > { %2305 = vsyncadd (%p2968_p9), [#allocation12], 4294967040  ;;  %458 = vmatprep.mubr.bf16.mxu1 %v2334_v0  ;;  %438 = vmatprep.mubr.bf16.mxu0 %v2334_v0  ;;  %vm393_vm0 = vcmask 130048   ;;  %v2594_v4 = vld [vmem:[#allocation10 + $0x4] ss:$8 sps:$4 sm:$0xff]   ;;  %v2002_v7 = vld [vmem:[%s2577_s9] sm:$0xff]  }
  0x92   : > { %1894 = vmatprep.subr.bf16.mxu1 %v1991_v1  ;;  %406 = vmatprep.subr.bf16.mxu0 %v1991_v1  ;;  %v2596_v5 = vld [vmem:[#allocation10] ss:$8 sps:$4 sm:$0xff]   ;;  %v2599_v6 = vld [vmem:[#allocation10 + $0x14] ss:$8 sps:$4 sm:$0xff]   ;;  %v2606_v8 = vld [vmem:[#allocation10 + $0x10] ss:$8 sps:$4 sm:$0xff]  }
  0x93   : > { %1895 = vmatpush1.bf16.msra.mxu1 %v1993_v2  ;;  %407 = vmatpush1.bf16.msra.mxu0 %v1993_v2  ;;  %v1998_v9 = vld [vmem:[%s2577_s9 + $0x18] sm:$0xff]   ;;  %v354_v15 = vshrl.u32 %v353_v10, 7  ;;  %v351_v21 = vld [vmem:[%s2931_s2] sm:$0x3]  ;;  %s2335_s21 = smov 64   ;;  %s2336_s29 = smov 32  }
  0x94   : > { %523 = vmatprep.subr.bf16.mxu1 %v2594_v4  ;;  %994 = vmatprep.subr.bf16.mxu0 %v2594_v4  ;;  %vm519_vm1 = vcmask 261120   ;;  %s1803_s11 = sshll.u32 %s2573_s20, 6  ;;  %vm1659_vm2 = vcmask 523264   ;;  %s1855_s19 = sshll.u32 %s2402_s28, 7 }
  0x95   : > { %v355_v20 = vsub.s32 0, %v354_v15  ;;  %v359_v27 = vsub.s32 1, %v354_v15  ;;  %s339_s30 = scalar_lea.vmem [#allocation13], %s1803_s11  ;;  %s2882_s24 = scalar_lea.hbm %s2936_s7, %s1855_s19 }
  0x96   : > { %1812 = vmatmul.mubr.msk.bf16.vlgmr.msra.gmra.mrb[0].mxu1 %vm393_vm0, %v1994_v3  ;;  %1810 = vmatmul.mubr.msk.bf16.vlgmr.msra.gmra.mrb[0].mxu0 %vm393_vm0, %v2002_v7  ;;  %s1681_s23 = sshll.u32 %s339_s30, 4  ;;  %s1669_s28 = scalar_lea.sflag [#allocation7], %s2573_s20  ;;  %s2876_s23 = int_to_ptr.vmem [resolvable:$true] %s1681_s23 }
  0x97   : > { %524 = vmatpush1.bf16.msra.mxu1 %v2596_v5  ;;  %468 = vmatprep.mubr.bf16.mxu1 %v2334_v0  ;;  %v2649_v25 = vrot.slane %v351_v21, %v355_v20  ;;  %v2652_v29 = vrot.slane %v351_v21, %v359_v27  ;;  %p2969_p1 = scmp.ne.s32.totalorder %s2952_s13, 0  ;;  %s2337_s12 = smov [#allocation13]  }
  0x98   : > { %525 = vmatprep.subr.bf16.mxu1 %v2599_v6  ;;  %448 = vmatprep.mubr.bf16.mxu0 %v2334_v0  ;;  %s2254_s15 = sshll.u32 %s2337_s12, 4  ;;  %s2255_s15 = int_to_ptr.vmem [resolvable:$false] %s2254_s15 }
  0x99   : > { %995 = vmatpush1.bf16.msra.mxu0 %v2596_v5  ;;  %p2257_p2 = scmp.lt.s32.totalorder %s2876_s23, %s2255_s15 }
  0x9a   : > { %996 = vmatprep.subr.bf16.mxu0 %v2599_v6 }
  0x9b   : > { %526 = vmatpush1.bf16.msra.mxu1 %v2606_v8 }
  0x9c   : > { %640 = vmatprep.subr.bf16.mxu1 %v2594_v4 }
  0x9d   : > { %997 = vmatpush1.bf16.msra.mxu0 %v2606_v8 }
  0x9e   : > { %1813 = vmatmul.mubr.msk.bf16.gmra.mrb[4].mxu1 %vm393_vm0, %v1998_v9  ;;  %1218 = vmatprep.subr.bf16.mxu0 %v2594_v4 }
  0x9f   : > { %555 = vmatprep.mubr.bf16.mxu1 %v2334_v0 }
  0xa6   : > { %556 = vmatmul.mubr.bf16.vlgmr.msra.gmra.mrb[8].mxu1 %v2334_v0 }
  0xa7   : > { %641 = vmatpush1.bf16.msra.mxu1 %v2596_v5  ;;  %672 = vmatprep.mubr.bf16.mxu1 %v2334_v0 }
  0xa8   : > { %642 = vmatprep.subr.bf16.mxu1 %v2599_v6 }
  0xab   : > { %643 = vmatpush1.bf16.msra.mxu1 %v2606_v8 }
  0xac   : > { %758 = vmatprep.subr.bf16.mxu1 %v2594_v4 }
 0x169   : > { %v2626_v11 = vpop.f32.mrb[0].mxu1  ;;  %v440_v14 = vpop.f32.mrb[0].mxu0 }
 0x16a   : > { %v2628_v12 = vpop.f32.mrb[1].mxu1  ;;  %v2634_v17 = vpop.f32.mrb[1].mxu0  ;;  %v441_v28 = vadd.f32 %v440_v14, %v2649_v25 }
 0x16b   : > { %v2630_v13 = vpop.f32.mrb[2].mxu1  ;;  %v2636_v18 = vpop.f32.mrb[2].mxu0 }
 0x16c   : > { %v2632_v16 = vpop.f32.mrb[3].mxu1  ;;  %v2638_v19 = vpop.f32.mrb[3].mxu0  ;;  %v445_v2 = vadd.f32 %v2636_v18, %v2649_v25 }
 0x171   : > { %v2643_v22 = vpop.f32.mrb[4].mxu1 }
 0x172   : > { %v2645_v23 = vpop.f32.mrb[5].mxu1 }
 0x173   : > { %v2647_v24 = vpop.f32.mrb[6].mxu1  ;;  %v473_v10 = vadd.f32 %v2645_v23, %v2652_v29 }
 0x174   : > { %v476_v26 = vpop.f32.mrb[7].mxu1 }
 0x175   : > { %v477_v33 = vadd.f32 %v476_v26, %v2652_v29 }
 0x179   : > { %v557_v30 = vpop.f32.mrb[8].mxu1 }
 0x17a   : > { %v568_v31 = vadd.f32 %v557_v30, %v441_v28  ;;  %v559_v32 = vpop.f32.mrb[9].mxu1 }
 0x17b   : > { %v560_v34 = vpop.f32.mrb[10].mxu1 }
 0x17c   : > { %2008 = vtanh.f32 %v568_v31  ;;  %v561_v35 = vpop.f32.mrb[11].mxu1  ;;  %v1818_v39 = vmul.f32 -1.442695, %v568_v31 }
 0x17d   : > { %v573_v36 = vadd.f32 %v561_v35, %v477_v33 }
 0x17f   : > { %2010 = vtanh.f32 %v573_v36  ;;  %v1819_v40 = vmul.f32 -1.442695, %v573_v36 }
 0x180   : > { %2012 = vpow2.f32 %v1818_v39 }
 0x181   : > { %2014 = vpow2.f32 %v1819_v40 }
 0x186   : > { %v2009_v37 = vpop.eup %2008 }
 0x187   : > { %592 = vrot.lane.b32.xlu0 %v2009_v37, %s2335_s21 }
 0x189   : > { %v2011_v38 = vpop.eup %2010 }
 0x18a   : > { %v2013_v41 = vpop.eup %2012 }
 0x18b   : > { %594 = vrot.lane.b32.xlu0 %v2011_v38, %s2335_s21  ;;  %v580_v42 = vadd.f32 1.0, %v2013_v41  ;;  %v2015_v43 = vpop.eup %2014 }
 0x18c   : > { %v581_v44 = vadd.f32 1.0, %v2015_v43 }
 0x18d   : > { %2016 = vrcp.f32 %v580_v42 }
 0x18e   : > { %2018 = vrcp.f32 %v581_v44  ;;  %v2003_v44 = vld [vmem:[%s2577_s9 + $0x8] sm:$0xff]   ;;  %s2250_s9 = scalar_lea.vmem %s2876_s23, 1024 }
 0x18f   : > { %1811 = vmatmul.mubr.msk.bf16.gmra.mrb[4].mxu0 %vm393_vm0, %v2003_v44  ;;  %p2251_p10 = scmp.ne.s32.totalorder %s2876_s23, %s2250_s9 }
 0x190   : > { %1026 = vmatprep.mubr.bf16.mxu0 %v2334_v0 }
 0x191   : > { %p2252_p4 = pnand %p2251_p10, %p2969_p1 }
 0x193   : > { %p2253_p0 = pneg %p2252_p4 }
 0x197   : > { %v2017_v45 = vpop.eup %2016 }
 0x198   : > { %v2019_v48 = vpop.eup %2018  ;;  %v588_v51 = vmul.f32 0.0, %v2017_v45 }
 0x199   : > { %v589_v54 = vmul.f32 0.0, %v2019_v48 }
 0x1f9   : > { %v593_v46 = vpop.permute.xlu0 %592 }
 0x1fa   : > { %v598_v47 = vmul.f32 %v2017_v45, %v593_v46 }
 0x1fc   : > { %602 = vrot.lane.b32.xlu1 %v598_v47, %s2336_s29 }
 0x1fd   : > { %v595_v49 = vpop.permute.xlu0 %594 }
 0x1fe   : > { %v599_v50 = vmul.f32 %v2019_v48, %v595_v49 }
 0x200   : > { %604 = vrot.lane.b32.xlu1 %v599_v50, %s2336_s29 }
 0x26e   : > { %v603_v52 = vpop.permute.xlu1 %602 }
 0x26f   : > { %v608_v53 = vadd.f32 %v603_v52, %v588_v51  ;;  %v450_v52 = vpop.f32.mrb[4].mxu0 }
 0x271   : > { %2020 = vtanh.f32 %v608_v53 }
 0x272   : > { %v605_v55 = vpop.permute.xlu1 %604 }
 0x273   : > { %v609_v56 = vadd.f32 %v605_v55, %v589_v54 }
 0x275   : > { %2022 = vtanh.f32 %v609_v56 }
 0x27b   : > { %v2021_v57 = vpop.eup %2020 }
 0x27c   : > { %614 = vrot.lane.b32.xlu0 %v2021_v57, %s2335_s21  ;;  %v451_v57 = vadd.f32 %v450_v52, %v2649_v25 }
 0x27f   : > { %v2023_v58 = vpop.eup %2022 }
 0x280   : > { %616 = vrot.lane.b32.xlu1 %v2023_v58, %s2335_s21 }
 0x2ee   : > { %v615_v59 = vpop.permute.xlu0 %614 }
 0x2ef   : > { %v2661_v61 = vmul.f32 %v2017_v45, %v615_v59 }
 0x2f2   : > { %v617_v60 = vpop.permute.xlu1 %616 }
 0x2f3   : > { %v2663_v62 = vmul.f32 %v2019_v48, %v617_v60 }
 0x2f5   : > { %v633_v63 = vpack.c.bf16 %v2663_v62, %v2661_v61 }
 0x2f7   : > { %635 = vrot.lane.b32.xlu0 %v633_v63, %s2336_s29  ;;  %v467_v63 = vadd.f32 %v2632_v16, %v2652_v29 }
 0x369   : > { %v636_v1 = vpop.permute.xlu0 %635 }
 0x36a   : > { %1820 = vmatmul.mubr.msk.bf16.vlgmr.msra.gmra.mrb[12].mxu1 %vm519_vm1, %v636_v1 }
 0x36b   : > { %759 = vmatpush1.bf16.msra.mxu1 %v2596_v5  ;;  %790 = vmatprep.mubr.bf16.mxu1 %v2334_v0 }
 0x36c   : > { %760 = vmatprep.subr.bf16.mxu1 %v2599_v6 }
 0x36f   : > { %761 = vmatpush1.bf16.msra.mxu1 %v2606_v8 }
 0x370   : > { %876 = vmatprep.subr.bf16.mxu1 %v2594_v4 }
 0x43d   : > { %v674_v3 = vpop.f32.mrb[12].mxu1 }
 0x43e   : > { %v685_v7 = vadd.f32 %v674_v3, %v445_v2  ;;  %v676_v9 = vpop.f32.mrb[13].mxu1 }
 0x43f   : > { %v677_v14 = vpop.f32.mrb[14].mxu1 }
 0x440   : > { %2024 = vtanh.f32 %v685_v7  ;;  %v678_v15 = vpop.f32.mrb[15].mxu1  ;;  %v1821_v27 = vmul.f32 -1.442695, %v685_v7 }
 0x441   : > { %v690_v20 = vadd.f32 %v678_v15, %v473_v10 }
 0x443   : > { %2026 = vtanh.f32 %v690_v20  ;;  %v1822_v28 = vmul.f32 -1.442695, %v690_v20 }
 0x444   : > { %2028 = vpow2.f32 %v1821_v27 }
 0x445   : > { %2030 = vpow2.f32 %v1822_v28 }
 0x44a   : > { %v2025_v21 = vpop.eup %2024 }
 0x44b   : > { %709 = vrot.lane.b32.xlu1 %v2025_v21, %s2335_s21 }
 0x44d   : > { %v2027_v26 = vpop.eup %2026 }
 0x44e   : > { %711 = vrot.lane.b32.xlu0 %v2027_v26, %s2335_s21  ;;  %v2029_v18 = vpop.eup %2028 }
 0x44f   : > { %v2031_v30 = vpop.eup %2030  ;;  %v697_v31 = vadd.f32 1.0, %v2029_v18 }
 0x450   : > { %v698_v32 = vadd.f32 1.0, %v2031_v30 }
 0x451   : > { %2032 = vrcp.f32 %v697_v31 }
 0x452   : > { %2034 = vrcp.f32 %v698_v32 }
 0x45b   : > { %v2033_v23 = vpop.eup %2032 }
 0x45c   : > { %v2035_v35 = vpop.eup %2034  ;;  %v705_v38 = vmul.f32 %v2033_v23, %v608_v53  ;;  %v2694_v53 = vpop.f32.mrb[5].mxu0 }
 0x45d   : > { %v706_v41 = vmul.f32 %v2035_v35, %v609_v56  ;;  %v454_v55 = vpop.f32.mrb[6].mxu0 }
 0x45e   : > { %v2702_v56 = vpop.f32.mrb[7].mxu0 }
 0x4bd   : > { %v710_v33 = vpop.permute.xlu1 %709 }
 0x4be   : > { %v715_v34 = vmul.f32 %v2033_v23, %v710_v33 }
 0x4c0   : > { %719 = vrot.lane.b32.xlu1 %v715_v34, %s2336_s29  ;;  %v712_v36 = vpop.permute.xlu0 %711 }
 0x4c1   : > { %v716_v37 = vmul.f32 %v2035_v35, %v712_v36 }
 0x4c3   : > { %721 = vrot.lane.b32.xlu0 %v716_v37, %s2336_s29 }
 0x532   : > { %v720_v39 = vpop.permute.xlu1 %719 }
 0x533   : > { %v725_v40 = vadd.f32 %v720_v39, %v705_v38 }
 0x535   : > { %2036 = vtanh.f32 %v725_v40  ;;  %v722_v42 = vpop.permute.xlu0 %721 }
 0x536   : > { %v726_v43 = vadd.f32 %v722_v42, %v706_v41 }
 0x538   : > { %2038 = vtanh.f32 %v726_v43 }
 0x53f   : > { %v2037_v45 = vpop.eup %2036 }
 0x540   : > { %731 = vrot.lane.b32.xlu1 %v2037_v45, %s2335_s21  ;;  %v455_v45 = vadd.f32 %v454_v55, %v2649_v25 }
 0x542   : > { %v2039_v46 = vpop.eup %2038 }
 0x543   : > { %733 = vrot.lane.b32.xlu0 %v2039_v46, %s2335_s21 }
 0x5b2   : > { %v732_v47 = vpop.permute.xlu1 %731 }
 0x5b3   : > { %v2687_v49 = vmul.f32 %v2033_v23, %v732_v47 }
 0x5b5   : > { %v734_v48 = vpop.permute.xlu0 %733 }
 0x5b6   : > { %v2689_v50 = vmul.f32 %v2035_v35, %v734_v48 }
 0x5b8   : > { %v751_v51 = vpack.c.bf16 %v2689_v50, %v2687_v49 }
 0x5ba   : > { %753 = vrot.lane.b32.xlu1 %v751_v51, %s2336_s29  ;;  %v463_v51 = vadd.f32 %v2628_v12, %v2652_v29 }
 0x62c   : > { %v754_v54 = vpop.permute.xlu1 %753 }
 0x62d   : > { %1823 = vmatmul.mubr.msk.bf16.vlgmr.msra.gmra.mrb[16].mxu1 %vm519_vm1, %v754_v54 }
 0x62e   : > { %877 = vmatpush1.bf16.msra.mxu1 %v2596_v5  ;;  %908 = vmatprep.mubr.bf16.mxu1 %v2334_v0 }
 0x62f   : > { %878 = vmatprep.subr.bf16.mxu1 %v2599_v6 }
 0x632   : > { %879 = vmatpush1.bf16.msra.mxu1 %v2606_v8 }
 0x633   : > { %1106 = vmatprep.subr.bf16.mxu1 %v2594_v4 }
 0x700   : > { %v792_v58 = vpop.f32.mrb[16].mxu1 }
 0x701   : > { %v803_v59 = vadd.f32 %v792_v58, %v451_v57  ;;  %v794_v60 = vpop.f32.mrb[17].mxu1 }
 0x702   : > { %v795_v1 = vpop.f32.mrb[18].mxu1 }
 0x703   : > { %2040 = vtanh.f32 %v803_v59  ;;  %v796_v2 = vpop.f32.mrb[19].mxu1  ;;  %v1824_v10 = vmul.f32 -1.442695, %v803_v59 }
 0x704   : > { %v808_v3 = vadd.f32 %v796_v2, %v467_v63 }
 0x706   : > { %2042 = vtanh.f32 %v808_v3  ;;  %v1825_v14 = vmul.f32 -1.442695, %v808_v3 }
 0x707   : > { %2044 = vpow2.f32 %v1824_v10 }
 0x708   : > { %2046 = vpow2.f32 %v1825_v14 }
 0x70d   : > { %v2041_v7 = vpop.eup %2040 }
 0x70e   : > { %827 = vrot.lane.b32.xlu0 %v2041_v7, %s2335_s21 }
 0x710   : > { %v2043_v9 = vpop.eup %2042 }
 0x711   : > { %829 = vrot.lane.b32.xlu1 %v2043_v9, %s2335_s21  ;;  %v2045_v15 = vpop.eup %2044 }
 0x712   : > { %v2047_v20 = vpop.eup %2046  ;;  %v815_v21 = vadd.f32 1.0, %v2045_v15 }
 0x713   : > { %v816_v26 = vadd.f32 1.0, %v2047_v20 }
 0x714   : > { %2048 = vrcp.f32 %v815_v21 }
 0x715   : > { %2050 = vrcp.f32 %v816_v26 }
 0x71e   : > { %v2049_v16 = vpop.eup %2048 }
 0x71f   : > { %v2051_v18 = vpop.eup %2050  ;;  %v823_v32 = vmul.f32 %v2049_v16, %v725_v40 }
 0x720   : > { %v824_v34 = vmul.f32 %v2051_v18, %v726_v43 }
 0x780   : > { %v828_v27 = vpop.permute.xlu0 %827 }
 0x781   : > { %v833_v28 = vmul.f32 %v2049_v16, %v828_v27 }
 0x783   : > { %837 = vrot.lane.b32.xlu0 %v833_v28, %s2336_s29  ;;  %v830_v30 = vpop.permute.xlu1 %829 }
 0x784   : > { %v834_v31 = vmul.f32 %v2051_v18, %v830_v30 }
 0x786   : > { %839 = vrot.lane.b32.xlu1 %v834_v31, %s2336_s29 }
 0x7f5   : > { %v838_v23 = vpop.permute.xlu0 %837 }
 0x7f6   : > { %v843_v33 = vadd.f32 %v838_v23, %v823_v32 }
 0x7f8   : > { %2052 = vtanh.f32 %v843_v33  ;;  %v840_v35 = vpop.permute.xlu1 %839 }
 0x7f9   : > { %v844_v36 = vadd.f32 %v840_v35, %v824_v34  ;;  %v461_v35 = vadd.f32 %v2626_v11, %v2649_v25 }
 0x7fb   : > { %2054 = vtanh.f32 %v844_v36 }
 0x802   : > { %v2053_v37 = vpop.eup %2052 }
 0x803   : > { %849 = vrot.lane.b32.xlu0 %v2053_v37, %s2335_s21 }
 0x805   : > { %v2055_v38 = vpop.eup %2054 }
 0x806   : > { %851 = vrot.lane.b32.xlu1 %v2055_v38, %s2335_s21 }
 0x875   : > { %v850_v39 = vpop.permute.xlu0 %849 }
 0x876   : > { %v2713_v42 = vmul.f32 %v2049_v16, %v850_v39  ;;  %v457_v39 = vadd.f32 %v2702_v56, %v2652_v29 }
 0x878   : > { %v852_v41 = vpop.permute.xlu1 %851 }
 0x879   : > { %v2715_v44 = vmul.f32 %v2051_v18, %v852_v41 }
 0x87b   : > { %v869_v40 = vpack.c.bf16 %v2715_v44, %v2713_v42 }
 0x87d   : > { %871 = vrot.lane.b32.xlu0 %v869_v40, %s2336_s29 }
 0x8ef   : > { %v872_v43 = vpop.permute.xlu0 %871 }
 0x8f0   : > { %1826 = vmatmul.mubr.msk.bf16.vlgmr.msra.gmra.mrb[20].mxu1 %vm519_vm1, %v872_v43 }
 0x8f1   : > { %1107 = vmatpush1.bf16.msra.mxu1 %v2596_v5  ;;  %1138 = vmatprep.mubr.bf16.mxu1 %v2334_v0 }
 0x8f2   : > { %1108 = vmatprep.subr.bf16.mxu1 %v2599_v6 }
 0x8f5   : > { %1109 = vmatpush1.bf16.msra.mxu1 %v2606_v8 }
 0x8f6   : > { %1330 = vmatprep.subr.bf16.mxu1 %v2594_v4 }
 0x9c3   : > { %v910_v46 = vpop.f32.mrb[20].mxu1 }
 0x9c4   : > { %v921_v47 = vadd.f32 %v910_v46, %v455_v45  ;;  %v912_v48 = vpop.f32.mrb[21].mxu1 }
 0x9c5   : > { %v913_v52 = vpop.f32.mrb[22].mxu1 }
 0x9c6   : > { %2056 = vtanh.f32 %v921_v47  ;;  %v914_v54 = vpop.f32.mrb[23].mxu1  ;;  %v1827_v4 = vmul.f32 -1.442695, %v921_v47 }
 0x9c7   : > { %v926_v57 = vadd.f32 %v914_v54, %v463_v51 }
 0x9c9   : > { %2058 = vtanh.f32 %v926_v57  ;;  %v1828_v60 = vmul.f32 -1.442695, %v926_v57 }
 0x9ca   : > { %2060 = vpow2.f32 %v1827_v4 }
 0x9cb   : > { %2062 = vpow2.f32 %v1828_v60 }
 0x9d0   : > { %v2057_v58 = vpop.eup %2056 }
 0x9d1   : > { %945 = vrot.lane.b32.xlu1 %v2057_v58, %s2335_s21 }
 0x9d3   : > { %v2059_v59 = vpop.eup %2058 }
 0x9d4   : > { %947 = vrot.lane.b32.xlu0 %v2059_v59, %s2335_s21  ;;  %v2061_v55 = vpop.eup %2060 }
 0x9d5   : > { %v2063_v63 = vpop.eup %2062  ;;  %v933_v1 = vadd.f32 1.0, %v2061_v55 }
 0x9d6   : > { %v934_v2 = vadd.f32 1.0, %v2063_v63 }
 0x9d7   : > { %2064 = vrcp.f32 %v933_v1 }
 0x9d8   : > { %2066 = vrcp.f32 %v934_v2 }
 0x9e1   : > { %v2065_v12 = vpop.eup %2064 }
 0x9e2   : > { %v2067_v9 = vpop.eup %2066  ;;  %v941_v15 = vmul.f32 %v2065_v12, %v843_v33 }
 0x9e3   : > { %v942_v26 = vmul.f32 %v2067_v9, %v844_v36 }
 0xa43   : > { %v946_v3 = vpop.permute.xlu1 %945 }
 0xa44   : > { %v951_v7 = vmul.f32 %v2065_v12, %v946_v3 }
 0xa46   : > { %955 = vrot.lane.b32.xlu1 %v951_v7, %s2336_s29  ;;  %v948_v10 = vpop.permute.xlu0 %947 }
 0xa47   : > { %v952_v14 = vmul.f32 %v2067_v9, %v948_v10 }
 0xa49   : > { %957 = vrot.lane.b32.xlu0 %v952_v14, %s2336_s29 }
 0xab8   : > { %v956_v20 = vpop.permute.xlu1 %955 }
 0xab9   : > { %v961_v21 = vadd.f32 %v956_v20, %v941_v15 }
 0xabb   : > { %2068 = vtanh.f32 %v961_v21  ;;  %v958_v16 = vpop.permute.xlu0 %957 }
 0xabc   : > { %v962_v27 = vadd.f32 %v958_v16, %v942_v26  ;;  %v465_v16 = vadd.f32 %v2630_v13, %v2649_v25 }
 0xabe   : > { %2070 = vtanh.f32 %v962_v27 }
 0xac5   : > { %v2069_v28 = vpop.eup %2068 }
 0xac6   : > { %967 = vrot.lane.b32.xlu1 %v2069_v28, %s2335_s21 }
 0xac8   : > { %v2071_v18 = vpop.eup %2070 }
 0xac9   : > { %969 = vrot.lane.b32.xlu0 %v2071_v18, %s2335_s21 }
 0xb38   : > { %v968_v30 = vpop.permute.xlu1 %967 }
 0xb39   : > { %v2735_v32 = vmul.f32 %v2065_v12, %v968_v30  ;;  %v453_v30 = vadd.f32 %v2694_v53, %v2652_v29 }
 0xb3b   : > { %v970_v31 = vpop.permute.xlu0 %969 }
 0xb3c   : > { %v2737_v23 = vmul.f32 %v2067_v9, %v970_v31 }
 0xb3e   : > { %v987_v33 = vpack.c.bf16 %v2737_v23, %v2735_v32 }
 0xb40   : > { %989 = vrot.lane.b32.xlu1 %v987_v33, %s2336_s29 }
 0xbb2   : > { %v990_v34 = vpop.permute.xlu1 %989 }
 0xbb3   : > { %1829 = vmatmul.mubr.msk.bf16.vlgmr.msra.gmra.mrb[8].mxu0 %vm519_vm1, %v990_v34 }
 0xbb4   : > { %1219 = vmatpush1.bf16.msra.mxu0 %v2596_v5  ;;  %1250 = vmatprep.mubr.bf16.mxu0 %v2334_v0 }
 0xbb5   : > { %1220 = vmatprep.subr.bf16.mxu0 %v2599_v6 }
 0xbb8   : > { %1221 = vmatpush1.bf16.msra.mxu0 %v2606_v8 }
 0xc86   : > { %v1028_v36 = vpop.f32.mrb[8].mxu0 }
 0xc87   : > { %v1036_v37 = vadd.f32 %v1028_v36, %v461_v35  ;;  %v1030_v38 = vpop.f32.mrb[9].mxu0 }
 0xc88   : > { %v1031_v41 = vpop.f32.mrb[10].mxu0 }
 0xc89   : > { %2072 = vtanh.f32 %v1036_v37  ;;  %v1032_v40 = vpop.f32.mrb[11].mxu0  ;;  %v1830_v47 = vmul.f32 -1.442695, %v1036_v37 }
 0xc8a   : > { %v1038_v43 = vadd.f32 %v1032_v40, %v457_v39 }
 0xc8c   : > { %2074 = vtanh.f32 %v1038_v43  ;;  %v1831_v48 = vmul.f32 -1.442695, %v1038_v43 }
 0xc8d   : > { %2076 = vpow2.f32 %v1830_v47 }
 0xc8e   : > { %2078 = vpow2.f32 %v1831_v48 }
 0xc93   : > { %v2073_v45 = vpop.eup %2072 }
 0xc94   : > { %1057 = vrot.lane.b32.xlu0 %v2073_v45, %s2335_s21 }
 0xc96   : > { %v2075_v46 = vpop.eup %2074 }
 0xc97   : > { %1059 = vrot.lane.b32.xlu1 %v2075_v46, %s2335_s21  ;;  %v2077_v11 = vpop.eup %2076 }
 0xc98   : > { %v2079_v51 = vpop.eup %2078  ;;  %v1045_v52 = vadd.f32 1.0, %v2077_v11 }
 0xc99   : > { %v1046_v54 = vadd.f32 1.0, %v2079_v51 }
 0xc9a   : > { %2080 = vrcp.f32 %v1045_v52 }
 0xc9b   : > { %2082 = vrcp.f32 %v1046_v54 }
 0xca4   : > { %v2081_v56 = vpop.eup %2080 }
 0xca5   : > { %v2083_v59 = vpop.eup %2082  ;;  %v1053_v55 = vmul.f32 %v2081_v56, %v961_v21 }
 0xca6   : > { %v1054_v2 = vmul.f32 %v2083_v59, %v962_v27 }
 0xd06   : > { %v1058_v57 = vpop.permute.xlu0 %1057 }
 0xd07   : > { %v1063_v58 = vmul.f32 %v2081_v56, %v1058_v57 }
 0xd09   : > { %1067 = vrot.lane.b32.xlu0 %v1063_v58, %s2336_s29  ;;  %v1060_v4 = vpop.permute.xlu1 %1059 }
 0xd0a   : > { %v1064_v60 = vmul.f32 %v2083_v59, %v1060_v4 }
 0xd0c   : > { %1069 = vrot.lane.b32.xlu1 %v1064_v60, %s2336_s29 }
 0xd7b   : > { %v1068_v63 = vpop.permute.xlu0 %1067 }
 0xd7c   : > { %v1073_v1 = vadd.f32 %v1068_v63, %v1053_v55  ;;  %v471_v55 = vadd.f32 %v2643_v22, %v2649_v25 }
 0xd7e   : > { %2084 = vtanh.f32 %v1073_v1  ;;  %v1070_v12 = vpop.permute.xlu1 %1069 }
 0xd7f   : > { %v1074_v3 = vadd.f32 %v1070_v12, %v1054_v2  ;;  %v447_v12 = vadd.f32 %v2638_v19, %v2652_v29 }
 0xd81   : > { %2086 = vtanh.f32 %v1074_v3 }
 0xd88   : > { %v2085_v7 = vpop.eup %2084 }
 0xd89   : > { %1079 = vrot.lane.b32.xlu0 %v2085_v7, %s2335_s21 }
 0xd8b   : > { %v2087_v9 = vpop.eup %2086 }
 0xd8c   : > { %1081 = vrot.lane.b32.xlu1 %v2087_v9, %s2335_s21 }
 0xdfb   : > { %v1080_v10 = vpop.permute.xlu0 %1079 }
 0xdfc   : > { %v2757_v15 = vmul.f32 %v2081_v56, %v1080_v10 }
 0xdfe   : > { %v1082_v14 = vpop.permute.xlu1 %1081 }
 0xdff   : > { %v2759_v20 = vmul.f32 %v2083_v59, %v1082_v14 }
 0xe01   : > { %v1099_v21 = vpack.c.bf16 %v2759_v20, %v2757_v15 }
 0xe03   : > { %1101 = vrot.lane.b32.xlu0 %v1099_v21, %s2336_s29 }
 0xe75   : > { %v1102_v26 = vpop.permute.xlu0 %1101 }
 0xe76   : > { %1832 = vmatmul.mubr.msk.bf16.vlgmr.msra.gmra.mrb[24].mxu1 %vm519_vm1, %v1102_v26 }
 0xe77   : > { %1331 = vmatpush1.bf16.msra.mxu1 %v2596_v5  ;;  %1362 = vmatprep.mubr.bf16.mxu1 %v2334_v0 }
 0xe78   : > { %1332 = vmatprep.subr.bf16.mxu1 %v2599_v6 }
 0xe7b   : > { %1333 = vmatpush1.bf16.msra.mxu1 %v2606_v8 }
 0xf49   : > { %v1140_v27 = vpop.f32.mrb[24].mxu1 }
 0xf4a   : > { %v1148_v28 = vadd.f32 %v1140_v27, %v465_v16  ;;  %v1142_v18 = vpop.f32.mrb[25].mxu1 }
 0xf4b   : > { %v1143_v31 = vpop.f32.mrb[26].mxu1 }
 0xf4c   : > { %2088 = vtanh.f32 %v1148_v28  ;;  %v1144_v33 = vpop.f32.mrb[27].mxu1  ;;  %v1833_v6 = vmul.f32 -1.442695, %v1148_v28 }
 0xf4d   : > { %v1150_v34 = vadd.f32 %v1144_v33, %v453_v30 }
 0xf4f   : > { %2090 = vtanh.f32 %v1150_v34  ;;  %v1834_v8 = vmul.f32 -1.442695, %v1150_v34 }
 0xf50   : > { %2092 = vpow2.f32 %v1833_v6 }
 0xf51   : > { %2094 = vpow2.f32 %v1834_v8 }
 0xf56   : > { %v2089_v5 = vpop.eup %2088 }
 0xf57   : > { %1169 = vrot.lane.b32.xlu1 %v2089_v5, %s2335_s21 }
 0xf59   : > { %v2091_v0 = vpop.eup %2090 }
 0xf5a   : > { %1171 = vrot.lane.b32.xlu0 %v2091_v0, %s2335_s21  ;;  %v2093_v13 = vpop.eup %2092 }
 0xf5b   : > { %v2095_v35 = vpop.eup %2094  ;;  %v1157_v36 = vadd.f32 1.0, %v2093_v13 }
 0xf5c   : > { %v1158_v37 = vadd.f32 1.0, %v2095_v35 }
 0xf5d   : > { %2096 = vrcp.f32 %v1157_v36 }
 0xf5e   : > { %2098 = vrcp.f32 %v1158_v37 }
 0xf67   : > { %v2097_v53 = vpop.eup %2096 }
 0xf68   : > { %v2099_v41 = vpop.eup %2098  ;;  %v1165_v45 = vmul.f32 %v2097_v53, %v1073_v1 }
 0xf69   : > { %v1166_v48 = vmul.f32 %v2099_v41, %v1074_v3 }
 0xfc9   : > { %v1170_v38 = vpop.permute.xlu1 %1169 }
 0xfca   : > { %v1175_v39 = vmul.f32 %v2097_v53, %v1170_v38 }
 0xfcc   : > { %1179 = vrot.lane.b32.xlu1 %v1175_v39, %s2336_s29  ;;  %v1172_v40 = vpop.permute.xlu0 %1171 }
 0xfcd   : > { %v1176_v43 = vmul.f32 %v2099_v41, %v1172_v40 }
 0xfcf   : > { %1181 = vrot.lane.b32.xlu0 %v1176_v43, %s2336_s29 }
0x103e   : > { %v1180_v46 = vpop.permute.xlu1 %1179 }
0x103f   : > { %v1185_v47 = vadd.f32 %v1180_v46, %v1165_v45  ;;  %v475_v45 = vadd.f32 %v2647_v24, %v2649_v25 }
0x1041   : > { %2100 = vtanh.f32 %v1185_v47  ;;  %v1182_v11 = vpop.permute.xlu0 %1181 }
0x1042   : > { %v1186_v51 = vadd.f32 %v1182_v11, %v1166_v48  ;;  %v443_v11 = vadd.f32 %v2634_v17, %v2652_v29 }
0x1044   : > { %2102 = vtanh.f32 %v1186_v51 }
0x104b   : > { %v2101_v52 = vpop.eup %2100 }
0x104c   : > { %1191 = vrot.lane.b32.xlu1 %v2101_v52, %s2335_s21 }
0x104e   : > { %v2103_v54 = vpop.eup %2102 }
0x104f   : > { %1193 = vrot.lane.b32.xlu0 %v2103_v54, %s2335_s21 }
0x10be   : > { %v1192_v56 = vpop.permute.xlu1 %1191 }
0x10bf   : > { %v2779_v58 = vmul.f32 %v2097_v53, %v1192_v56 }
0x10c1   : > { %v1194_v57 = vpop.permute.xlu0 %1193 }
0x10c2   : > { %v2781_v59 = vmul.f32 %v2099_v41, %v1194_v57 }
0x10c4   : > { %v1211_v4 = vpack.c.bf16 %v2781_v59, %v2779_v58 }
0x10c6   : > { %1213 = vrot.lane.b32.xlu1 %v1211_v4, %s2336_s29 }
0x1138   : > { %v1214_v60 = vpop.permute.xlu1 %1213 }
0x1139   : > { %1835 = vmatmul.mubr.msk.bf16.vlgmr.msra.gmra.mrb[12].mxu0 %vm519_vm1, %v1214_v60 }
0x120c   : > { %v1252_v63 = vpop.f32.mrb[12].mxu0 }
0x120d   : > { %v1260_v1 = vadd.f32 %v1252_v63, %v471_v55  ;;  %v1254_v2 = vpop.f32.mrb[13].mxu0 }
0x120e   : > { %v1255_v3 = vpop.f32.mrb[14].mxu0 }
0x120f   : > { %2104 = vtanh.f32 %v1260_v1  ;;  %v1256_v7 = vpop.f32.mrb[15].mxu0  ;;  %v1836_v21 = vmul.f32 -1.442695, %v1260_v1 }
0x1210   : > { %v1262_v9 = vadd.f32 %v1256_v7, %v447_v12 }
0x1212   : > { %2106 = vtanh.f32 %v1262_v9  ;;  %v1837_v26 = vmul.f32 -1.442695, %v1262_v9 }
0x1213   : > { %2108 = vpow2.f32 %v1836_v21 }
0x1214   : > { %2110 = vpow2.f32 %v1837_v26 }
0x1219   : > { %v2105_v10 = vpop.eup %2104 }
0x121a   : > { %1281 = vrot.lane.b32.xlu0 %v2105_v10, %s2335_s21 }
0x121c   : > { %v2107_v14 = vpop.eup %2106 }
0x121d   : > { %1283 = vrot.lane.b32.xlu1 %v2107_v14, %s2335_s21  ;;  %v2109_v22 = vpop.eup %2108 }
0x121e   : > { %v2111_v16 = vpop.eup %2110  ;;  %v1269_v27 = vadd.f32 1.0, %v2109_v22 }
0x121f   : > { %v1270_v28 = vadd.f32 1.0, %v2111_v16 }
0x1220   : > { %2112 = vrcp.f32 %v1269_v27 }
0x1221   : > { %2114 = vrcp.f32 %v1270_v28 }
0x122a   : > { %v2113_v19 = vpop.eup %2112 }
0x122b   : > { %v2115_v31 = vpop.eup %2114  ;;  %v1277_v5 = vmul.f32 %v2113_v19, %v1185_v47 }
0x122c   : > { %v1278_v8 = vmul.f32 %v2115_v31, %v1186_v51 }
0x128c   : > { %v1282_v18 = vpop.permute.xlu0 %1281 }
0x128d   : > { %v1287_v30 = vmul.f32 %v2113_v19, %v1282_v18 }
0x128f   : > { %1291 = vrot.lane.b32.xlu0 %v1287_v30, %s2336_s29  ;;  %v1284_v33 = vpop.permute.xlu1 %1283 }
0x1290   : > { %v1288_v34 = vmul.f32 %v2115_v31, %v1284_v33 }
0x1292   : > { %1293 = vrot.lane.b32.xlu1 %v1288_v34, %s2336_s29 }
0x1301   : > { %v1292_v0 = vpop.permute.xlu0 %1291 }
0x1302   : > { %v1297_v6 = vadd.f32 %v1292_v0, %v1277_v5 }
0x1304   : > { %2116 = vtanh.f32 %v1297_v6  ;;  %v1294_v13 = vpop.permute.xlu1 %1293 }
0x1305   : > { %v1298_v35 = vadd.f32 %v1294_v13, %v1278_v8 }
0x1307   : > { %2118 = vtanh.f32 %v1298_v35 }
0x130e   : > { %v2117_v36 = vpop.eup %2116 }
0x130f   : > { %1303 = vrot.lane.b32.xlu0 %v2117_v36, %s2335_s21 }
0x1311   : > { %v2119_v37 = vpop.eup %2118 }
0x1312   : > { %1305 = vrot.lane.b32.xlu1 %v2119_v37, %s2335_s21 }
0x1381   : > { %v1304_v53 = vpop.permute.xlu0 %1303 }
0x1382   : > { %v1309_v39 = vmul.f32 %v2113_v19, %v1304_v53 }
0x1384   : > { %v1306_v38 = vpop.permute.xlu1 %1305 }
0x1385   : > { %v1310_v41 = vmul.f32 %v2115_v31, %v1306_v38 }
0x1387   : > { %v1323_v40 = vpack.c.bf16 %v1310_v41, %v1309_v39 }
0x1389   : > { %1325 = vrot.lane.b32.xlu0 %v1323_v40, %s2336_s29 }
0x13fb   : > { %v1326_v43 = vpop.permute.xlu0 %1325 }
0x13fc   : > { %1838 = vmatmul.mubr.msk.bf16.vlgmr.msra.gmra.mrb[28].mxu1 %vm519_vm1, %v1326_v43 }
0x14cf   : > { %v1364_v46 = vpop.f32.mrb[28].mxu1 }
0x14d0   : > { %v1372_v47 = vadd.f32 %v1364_v46, %v475_v45  ;;  %v1366_v48 = vpop.f32.mrb[29].mxu1 }
0x14d1   : > { %v1367_v51 = vpop.f32.mrb[30].mxu1 }
0x14d2   : > { %2120 = vtanh.f32 %v1372_v47  ;;  %v1368_v52 = vpop.f32.mrb[31].mxu1  ;;  %v1839_v4 = vmul.f32 -1.442695, %v1372_v47 }
0x14d3   : > { %v1374_v54 = vadd.f32 %v1368_v52, %v443_v11 }
0x14d5   : > { %2122 = vtanh.f32 %v1374_v54  ;;  %v1840_v60 = vmul.f32 -1.442695, %v1374_v54 }
0x14d6   : > { %2124 = vpow2.f32 %v1839_v4 }
0x14d7   : > { %2126 = vpow2.f32 %v1840_v60 }
0x14dc   : > { %v2121_v56 = vpop.eup %2120 }
0x14dd   : > { %1393 = vrot.lane.b32.xlu0 %v2121_v56, %s2335_s21 }
0x14df   : > { %v2123_v57 = vpop.eup %2122 }
0x14e0   : > { %1395 = vrot.lane.b32.xlu1 %v2123_v57, %s2335_s21  ;;  %v2125_v24 = vpop.eup %2124 }
0x14e1   : > { %v2127_v25 = vpop.eup %2126  ;;  %v1381_v55 = vadd.f32 1.0, %v2125_v24 }
0x14e2   : > { %v1382_v63 = vadd.f32 1.0, %v2127_v25 }
0x14e3   : > { %2128 = vrcp.f32 %v1381_v55  ;;  %v1853_v55 = vld [vmem:[%s2935_s6] ss:$0 sm:$0xff] }
0x14e4   : > { %2130 = vrcp.f32 %v1382_v63 }
0x14ed   : > { %v2129_v17 = vpop.eup %2128 }
0x14ee   : > { %v2131_v2 = vpop.eup %2130  ;;  %v1389_v7 = vmul.f32 %v2129_v17, %v1297_v6 }
0x14ef   : > { %v1390_v14 = vmul.f32 %v2131_v2, %v1298_v35  ;;  %v2007_v35 = vld [vmem:[#allocation11 + $0x8] sm:$0xff]  }
0x154f   : > { %v1394_v29 = vpop.permute.xlu0 %1393 }
0x1550   : > { %v1399_v1 = vmul.f32 %v2129_v17, %v1394_v29 }
0x1552   : > { %1403 = vrot.lane.b32.xlu0 %v1399_v1, %s2336_s29  ;;  %v1396_v12 = vpop.permute.xlu1 %1395 }
0x1553   : > { %v1400_v3 = vmul.f32 %v2131_v2, %v1396_v12 }
0x1555   : > { %1405 = vrot.lane.b32.xlu1 %v1400_v3, %s2336_s29 }
0x15c4   : > { %v1404_v9 = vpop.permute.xlu0 %1403 }
0x15c5   : > { %v1409_v10 = vadd.f32 %v1404_v9, %v1389_v7 }
0x15c7   : > { %2132 = vtanh.f32 %v1409_v10  ;;  %v1406_v21 = vpop.permute.xlu1 %1405 }
0x15c8   : > { %v1410_v26 = vadd.f32 %v1406_v21, %v1390_v14 }
0x15ca   : > { %2134 = vtanh.f32 %v1410_v26 }
0x15d1   : > { %v2133_v22 = vpop.eup %2132 }
0x15d2   : > { %1415 = vrot.lane.b32.xlu0 %v2133_v22, %s2335_s21 }
0x15d4   : > { %v2135_v16 = vpop.eup %2134 }
0x15d5   : > { %1417 = vrot.lane.b32.xlu1 %v2135_v16, %s2335_s21  ;;  %s2256_s21 = scalar_lea.vmem %s2255_s15, 2048 }
0x15d6   : > { %p2258_p5 = scmp.lt.s32.totalorder %s2256_s21, %s2250_s9 }
0x15d8   : > { %p2259_p11 = por %p2258_p5, %p2257_p2 }
0x15d9   : > { %1318 = vrot.lane.b32.xlu1 %v1310_v41, %s2336_s29 }
0x15da   : > { %p2260_p12 = pnand %p2259_p11, %p2253_p0 }
0x15dd   : > { %1094 = vrot.lane.b32.xlu1 %v2759_v20, %s2336_s29  ;;  %v2004_v20 = vld [vmem:[%s2934_s5] sm:$0xff]  }
0x15de   : > { %1870 = vmatprep.subr.bf16.mxu0 %v2004_v20 }
0x15df   : > { %1871 = vmatpush3.bf16.msra.mxu0 %v2004_v20 }
0x15e1   : > { %864 = vrot.lane.b32.xlu1 %v2715_v44, %s2336_s29 }
0x15e5   : > { %628 = vrot.lane.b32.xlu1 %v2663_v62, %s2336_s29  ;;  %v2005_v62 = vld [vmem:[%s2934_s5 + $0x8] sm:$0xff]  }
0x15e6   : > { %1872 = vmatprep.subr.bf16.mxu0 %v2005_v62 }
0x15e7   : > { %1873 = vmatpush3.bf16.msra.mxu0 %v2005_v62 }
0x15e9   : > { %623 = vrot.lane.b32.xlu1 %v2661_v61, %s2336_s29 }
0x15ed   : > { %858 = vrot.lane.b32.xlu1 %v2713_v42, %s2336_s29 }
0x15f1   : > { %1088 = vrot.lane.b32.xlu1 %v2757_v15, %s2336_s29  ;;  %v2006_v15 = vld [vmem:[#allocation11] sm:$0xff]  }
0x15f2   : > { %1882 = vmatprep.subr.bf16.mxu0 %v2006_v15 }
0x15f5   : > { %1312 = vrot.lane.b32.xlu1 %v1309_v39, %s2336_s29 }
0x1647   : > { %v1418_v44 = vpop.permute.xlu1 %1417 }
0x1648   : > { %v1422_v61 = vmul.f32 %v2131_v2, %v1418_v44 }
0x164a   : > { %1430 = vrot.lane.b32.xlu0 %v1422_v61, %s2336_s29 }
0x164b   : > { %v1319_v42 = vpop.permute.xlu1 %1318 }
0x164c   : > { %1322 = vst.msk [vmem:[#allocation4 + $0x8] sm:$0xff] %vm519_vm1, %v1319_v42 }
0x164e   : > { %1206 = vrot.lane.b32.xlu0 %v2781_v59, %s2336_s29 }
0x164f   : > { %v1095_v27 = vpop.permute.xlu1 %1094 }
0x1650   : > { %1098 = vst.msk [vmem:[#allocation4 + $0x18] sm:$0xff] %vm519_vm1, %v1095_v27 }
0x1652   : > { %982 = vrot.lane.b32.xlu0 %v2737_v23, %s2336_s29  ;;  %v1416_v23 = vpop.permute.xlu0 %1415 }
0x1653   : > { %v865_v28 = vpop.permute.xlu1 %864  ;;  %v1421_v30 = vmul.f32 %v2129_v17, %v1416_v23  ;;  %v1451_v5 = vld [vmem:[#allocation4 + $0x8] sm:$0xff] }
0x1654   : > { %868 = vst.msk [vmem:[#allocation4 + $0x28] sm:$0xff] %vm519_vm1, %v865_v28 }
0x1656   : > { %746 = vrot.lane.b32.xlu0 %v2689_v50, %s2336_s29 }
0x1657   : > { %v629_v19 = vpop.permute.xlu1 %628  ;;  %v1453_v8 = vld [vmem:[#allocation4 + $0x18] sm:$0xff] }
0x1658   : > { %632 = vst.msk [vmem:[#allocation4 + $0x38] sm:$0xff] %vm519_vm1, %v629_v19 }
0x165a   : > { %740 = vrot.lane.b32.xlu0 %v2687_v49, %s2336_s29 }
0x165b   : > { %v624_v18 = vpop.permute.xlu1 %623  ;;  %v1455_v53 = vld [vmem:[#allocation4 + $0x28] sm:$0xff] }
0x165c   : > { %626 = vst.msk [vmem:[#allocation3] sm:$0xff] %vm519_vm1, %v624_v18 }
0x165e   : > { %976 = vrot.lane.b32.xlu0 %v2735_v32, %s2336_s29 }
0x165f   : > { %v859_v59 = vpop.permute.xlu1 %858  ;;  %v1457_v40 = vld [vmem:[#allocation4 + $0x38] sm:$0xff] }
0x1660   : > { %862 = vst.msk [vmem:[#allocation3 + $0x10] sm:$0xff] %vm519_vm1, %v859_v59 }
0x1662   : > { %1200 = vrot.lane.b32.xlu0 %v2779_v58, %s2336_s29 }
0x1663   : > { %v1089_v50 = vpop.permute.xlu1 %1088  ;;  %v1434_v46 = vld [vmem:[#allocation3] sm:$0xff] }
0x1664   : > { %1092 = vst.msk [vmem:[#allocation3 + $0x20] sm:$0xff] %vm519_vm1, %v1089_v50 }
0x1666   : > { %1424 = vrot.lane.b32.xlu0 %v1421_v30, %s2336_s29 }
0x1667   : > { %v1313_v49 = vpop.permute.xlu1 %1312  ;;  %v1436_v51 = vld [vmem:[#allocation3 + $0x10] sm:$0xff] }
0x1668   : > { %1316 = vst.msk [vmem:[#allocation3 + $0x30] sm:$0xff] %vm519_vm1, %v1313_v49 }
0x166b   : > { %v1438_v56 = vld [vmem:[#allocation3 + $0x20] sm:$0xff] }
0x166f   : > { %v1440_v60 = vld [vmem:[#allocation3 + $0x30] sm:$0xff] }
0x16bc   : > { %v1431_v31 = vpop.permute.xlu0 %1430 }
0x16bd   : > { %1433 = vst.msk [vmem:[#allocation4] sm:$0xff] %vm519_vm1, %v1431_v31 }
0x16c0   : > { %v1207_v32 = vpop.permute.xlu0 %1206 }
0x16c1   : > { %1210 = vst.msk [vmem:[#allocation4 + $0x10] sm:$0xff] %vm519_vm1, %v1207_v32 }
0x16c4   : > { %v983_v33 = vpop.permute.xlu0 %982  ;;  %v1450_v34 = vld [vmem:[#allocation4] sm:$0xff] }
0x16c5   : > { %986 = vst.msk [vmem:[#allocation4 + $0x20] sm:$0xff] %vm519_vm1, %v983_v33  ;;  %v1458_v58 = vpack.c.bf16 %v1451_v5, %v1450_v34 }
0x16c7   : > { %1874 = vmatprep.mubr.msk.bf16.mxu0 %vm519_vm1, %v1458_v58 }
0x16c8   : > { %v747_v0 = vpop.permute.xlu0 %746  ;;  %v1452_v6 = vld [vmem:[#allocation4 + $0x10] sm:$0xff] }
0x16c9   : > { %750 = vst.msk [vmem:[#allocation4 + $0x30] sm:$0xff] %vm519_vm1, %v747_v0  ;;  %v1459_v13 = vpack.c.bf16 %v1453_v8, %v1452_v6 }
0x16cb   : > { %1875 = vmatmul.mubr.msk.bf16.vlgmr.msra.gmra.mrb[16].mxu0 %vm519_vm1, %v1459_v13 }
0x16cc   : > { %v741_v36 = vpop.permute.xlu0 %740  ;;  %1883 = vmatpush3.bf16.msra.mxu0 %v2006_v15  ;;  %v1454_v37 = vld [vmem:[#allocation4 + $0x20] sm:$0xff] }
0x16cd   : > { %744 = vst.msk [vmem:[#allocation3 + $0x8] sm:$0xff] %vm519_vm1, %v741_v36  ;;  %v1460_v38 = vpack.c.bf16 %v1455_v53, %v1454_v37  ;;  %1884 = vmatprep.subr.bf16.mxu0 %v2007_v35 }
0x16cf   : > { %1878 = vmatprep.mubr.msk.bf16.mxu0 %vm519_vm1, %v1460_v38 }
0x16d0   : > { %v977_v39 = vpop.permute.xlu0 %976  ;;  %v1456_v41 = vld [vmem:[#allocation4 + $0x30] sm:$0xff]  ;;  %1885 = vmatpush3.bf16.msra.mxu0 %v2007_v35 }
0x16d1   : > { %980 = vst.msk [vmem:[#allocation3 + $0x18] sm:$0xff] %vm519_vm1, %v977_v39  ;;  %v1461_v43 = vpack.c.bf16 %v1457_v40, %v1456_v41 }
0x16d3   : > { %1879 = vmatmul.mubr.msk.bf16.gmra.mrb[20].mxu0 %vm519_vm1, %v1461_v43 }
0x16d4   : > { %v1201_v45 = vpop.permute.xlu0 %1200  ;;  %v1435_v47 = vld [vmem:[#allocation3 + $0x8] sm:$0xff] }
0x16d5   : > { %1204 = vst.msk [vmem:[#allocation3 + $0x28] sm:$0xff] %vm519_vm1, %v1201_v45  ;;  %v1442_v48 = vpack.c.bf16 %v1435_v47, %v1434_v46 }
0x16d7   : > { %1886 = vmatprep.mubr.msk.bf16.mxu0 %vm519_vm1, %v1442_v48 }
0x16d8   : > { %v1425_v11 = vpop.permute.xlu0 %1424  ;;  %v1437_v52 = vld [vmem:[#allocation3 + $0x18] sm:$0xff] }
0x16d9   : > { %1428 = vst.msk [vmem:[#allocation3 + $0x38] sm:$0xff] %vm519_vm1, %v1425_v11  ;;  %v1443_v54 = vpack.c.bf16 %v1437_v52, %v1436_v51 }
0x16db   : > { %1887 = vmatmul.mubr.msk.bf16.vlgmr.msra.gmra.mrb[16].mxu0 %vm519_vm1, %v1443_v54 }
0x16dc   : > { %v1439_v57 = vld [vmem:[#allocation3 + $0x28] sm:$0xff] }
0x16dd   : > { %v1444_v4 = vpack.c.bf16 %v1439_v57, %v1438_v56 }
0x16df   : > { %1890 = vmatprep.mubr.msk.bf16.mxu0 %vm519_vm1, %v1444_v4 }
0x16e0   : > { %v1441_v24 = vld [vmem:[#allocation3 + $0x38] sm:$0xff] }
0x16e1   : > { %v1445_v25 = vpack.c.bf16 %v1441_v24, %v1440_v60 }
0x16e3   : > { %1891 = vmatmul.mubr.msk.bf16.gmra.mrb[20].mxu0 %vm519_vm1, %v1445_v25 }
0x17ae   : > { %v1888_v63 = vpop.f32.mrb[16].mxu0 }
0x17af   : > { %v1653_v17 = vadd.f32 %v1888_v63, %v1853_v55  ;;  %v1613_v29 = vpop.f32.mrb[17].mxu0 }
0x17b0   : > { %v1651_v1 = vadd.f32 %v1853_v55, %v1613_v29  ;;  %v1889_v2 = vpop.f32.mrb[18].mxu0 }
0x17b1   : > { %1662 = vst.msk [vmem:[%s339_s30 + $0x10] sm:$0xff] %vm1659_vm2, %v1653_v17  ;;  %v1654_v12 = vadd.f32 %v1889_v2, %v1853_v55  ;;  %v1616_v3 = vpop.f32.mrb[19].mxu0 }
0x17b2   : > { %1660 = vst.msk [vmem:[%s339_s30] sm:$0xff] %vm1659_vm2, %v1651_v1  ;;  %v1652_v7 = vadd.f32 %v1853_v55, %v1616_v3 }
0x17b3   : > { %1663 = vst.msk [vmem:[%s339_s30 + $0x18] sm:$0xff] %vm1659_vm2, %v1654_v12 }
0x17b4   : > { %1661 = vst.msk [vmem:[%s339_s30 + $0x8] sm:$0xff] %vm1659_vm2, %v1652_v7 }
0x17b6   : > { %v1892_v9 = vpop.f32.mrb[20].mxu0 }
0x17b7   : > { %v1657_v10 = vadd.f32 %v1892_v9, %v1853_v55  ;;  %v1629_v14 = vpop.f32.mrb[21].mxu0 }
0x17b8   : > { %v1655_v21 = vadd.f32 %v1853_v55, %v1629_v14  ;;  %v1893_v26 = vpop.f32.mrb[22].mxu0 }
0x17b9   : > { %1666 = vst.msk [vmem:[%s339_s30 + $0x30] sm:$0xff] %vm1659_vm2, %v1657_v10  ;;  %v1658_v22 = vadd.f32 %v1893_v26, %v1853_v55  ;;  %v1632_v16 = vpop.f32.mrb[23].mxu0 }
0x17ba   : > { %1664 = vst.msk [vmem:[%s339_s30 + $0x20] sm:$0xff] %vm1659_vm2, %v1655_v21  ;;  %v1656_v20 = vadd.f32 %v1853_v55, %v1632_v16 }
0x17bb   : > { %1667 = vst.msk [vmem:[%s339_s30 + $0x38] sm:$0xff] %vm1659_vm2, %v1658_v22 }
0x17bc   : > { %1665 = vst.msk [vmem:[%s339_s30 + $0x28] sm:$0xff] %vm1659_vm2, %v1656_v20 }
0x17bd   : > { %2263 = shalt.err (!%p2260_p12)
}
0x17be   : > { %s2264_s29 = scalar_lea.hbm %s2882_s24, 1024  ;;  %s2268_s22 = scalar_lea.hbm %s2936_s7, 2048 }
0x17bf   : > { %p2265_p3 = scmp.ne.s32.totalorder %s2882_s24, %s2264_s29  ;;  %p2269_p13 = scmp.lt.u32.totalorder %s2882_s24, %s2936_s7 }
0x17c0   : > { %p2270_p7 = scmp.lt.u32.totalorder %s2268_s22, %s2264_s29  ;;  %p2272_p10 = scmp.lt.u32.totalorder %s2264_s29, %s2882_s24 }
0x17c1   : > { %p2266_p6 = pnand %p2265_p3, %p2969_p1 }
0x17c2   : > { %p2271_p9 = por %p2270_p7, %p2269_p13 }
0x17c3   : > { %p2267_p8 = pneg %p2266_p6 }
0x17c4   : > { %p2273_p4 = por %p2272_p10, %p2271_p9 }
0x17c6   : > { %p2274_p0 = pnand %p2273_p4, %p2267_p8 }
0x17c8   : > { %2277 = shalt.err (!%p2274_p0)
}
0x17c9   : > { %s2338_s14 = smov 128   ;;  %s2339_s16 = smov 256  }
0x17ca   : > { %s2340_s30 = smov 8  }
0x17cb   : > { %1918 = dma.vmem_to_hbm [thread:$0]  (%p2969_p1), %s2876_s23, 1024, %s2882_s24, %s1669_s28, %s2338_s14, %s2339_s16, %s2340_s30  }
0x17cc PF: > { %s2970_s19 = sld [smem:[#allocation18_spill]]  ;;  %s2971_s18 = sld [smem:[#allocation21_spill]] }
0x17cd   : > { %p2973_p5 = scmp.ge.s32.totalorder %s2324_s27, 2 }
0x17d2   : > { %s1696_s8 = sand.u32 1, %s2970_s19   ;;  %p2972_p2 = scmp.ne.s32.totalorder %s2971_s18, 0 }
0x17d3   : > { %s1697_s9 = scalar_lea.sflag [#allocation7], %s1696_s8 }
0x17d4   : > { %p1935_p11 = pnand %p2973_p5, %p2972_p2 }
0x17d6   : > { %2307 = dma.done.wait (!%p1935_p11), %s1697_s9, 1024  }
0x17d7   : > { %2309 = vsyncadd (!%p1935_p11), %s1697_s9, 4294966272  ;;  %s2974_s27 = sld [smem:[#allocation19_spill]]  ;;  %s2975_s12 = sld [smem:[#allocation20_spill]] }
0x17d8   : > { %s2976_s24 = smov %s2316_s25  ;;  %s2977_s25 = smov %s2320_s26 }
0x17dd   : > { %p22_p12 = scmp.ge.s32.totalorder %s2974_s27, 4   ;;  %s2978_s26 = smov %s2975_s12 }
0x17df   :  { %24 = sbr.rel (!%p22_p12) target bundleno = 9 (0x9), region = 127 }
0x17e6   :  { %1702 = vsyncpa [#allocation6], 1 }
0x17e7   :  { %1704 = vsyncpa [#allocation6 + $0x1], 1 }
0x17e8   :  { %1705 = vsyncpa [#allocation9], 1 }
0x17e9   :  { %1706 = vsyncpa [#allocation12], 1 }
0x17ea   :  { %1707 = vsyncpa [#allocation7], 1 }
0x17eb   :  { %1709 = vsyncpa [#allocation7 + $0x1], 1 }

</bundles_post_ra>
